<compile_context>
chip_gen: v5e
topology: v5e:2x2
jax: 0.10.0
libtpu: 0.0.40
codegen_flags: <defaults>
</compile_context>

<pallas_src>
import functools

import jax
import jax.numpy as jnp
from jax.experimental import pallas as pl
from jax.experimental.pallas import tpu as pltpu


OUT_SLAB = 128  # lane-dense output width (must be >= S + 1); ids are padded to this width too


# ----------------------------- fused kernel -----------------------------

def fused_ufm2_kernel(*refs, compute_attn: bool, seq_len: int):
    if compute_attn:
        (ids_ref,      # VMEM (block_b, OUT_SLAB) int32 (cols >= S are padding token 0)
         tab_ref,      # VMEM (block_b, T)
         embed_ref,    # VMEM (V, D)   embedding table, fully VMEM-resident (small-vocab fast path)
         logit_ref,    # VMEM (V, 1)   precomputed attention logit per vocab entry
         w1_tab_ref,   # VMEM (T, H)
         w1_txt_ref,   # VMEM (D, H)
         b1_ref,       # VMEM (1, H)
         w2_ref,       # VMEM (1, H)   row form of the (H, 1) output weight
         b2_ref,       # VMEM (1, 1)
         out_ref,      # VMEM (block_b, OUT_SLAB)
         ) = refs
    else:
        (ids_ref, tab_ref, embed_ref,
         w1_tab_ref, w1_txt_ref, b1_ref, w2_ref, b2_ref, out_ref) = refs
        logit_ref = None

    block_b, slab = out_ref.shape
    v, d = embed_ref.shape

    ids = ids_ref[...]                                                     # (block_b, slab) int32

    # ---- 1. token-0 embedding row per sequence: one-hot compare + MXU matmul (in-VMEM gather, zero DMAs) ----
    vocab_iota = jax.lax.broadcasted_iota(jnp.int32, (block_b, v), 1)
    oh0 = (ids[:, 0:1] == vocab_iota).astype(jnp.float32)                  # (block_b, V)
    text_repr = jnp.dot(oh0, embed_ref[...],
                        preferred_element_type=jnp.float32)                # (block_b, D)

    # ---- 2. reasoning head: relu([tab, text] @ W1 + b1) @ w2 + b2, concat folded into split W1 ----
    # (tabular matmul is tiny (K=T, N=H); MXU has plenty of slack here, so both halves use jnp.dot)
    h = (jnp.dot(tab_ref[...], w1_tab_ref[...], preferred_element_type=jnp.float32)
         + jnp.dot(text_repr, w1_txt_ref[...], preferred_element_type=jnp.float32)
         + b1_ref[...])
    h = jnp.maximum(h, 0.0)                                                # (block_b, H)
    # N=1 output column stays off the MXU: VPU multiply + lane reduce.
    head = jnp.sum(h * w2_ref[...], axis=-1, keepdims=True) + b2_ref[...]  # (block_b, 1)

    lane = jax.lax.broadcasted_iota(jnp.int32, (block_b, slab), 1)

    if compute_attn:
        # ---- 3. interpretable attention (computed-and-discarded by the torch forward) ----
        # Gather per-token logits from the (V, 1) table with a 3-D one-hot mask: ids stay in lanes,
        # vocab runs over sublanes, reduce over vocab -> lane-dense (block_b, slab) logits.
        voc3 = jax.lax.broadcasted_iota(jnp.int32, (block_b, v, slab), 1)
        oh3 = (ids[:, None, :] == voc3).astype(jnp.float32)                # (block_b, V, slab)
        logits = jnp.sum(oh3 * logit_ref[...][None, :, :], axis=1)         # (block_b, slab)
        logits = jnp.where(lane < seq_len, logits, jnp.float32(-1e30))     # mask padded positions
        m = jnp.max(logits, axis=-1, keepdims=True)
        e = jnp.exp(logits - m)
        attn = e / jnp.sum(e, axis=-1, keepdims=True)                      # zeros at padded lanes

        # ---- 4. lane-mask select (no concatenate): attn in cols [0,S), head at col S, zeros elsewhere ----
        out_ref[...] = jnp.where(lane == seq_len, head, attn)
    else:
        # Fast path: attention statically skipped (the torch forward discards it); head lands in col 0.
        out_ref[...] = jnp.where(lane == 0, head, jnp.float32(0.0))


# ----------------------------- wrapper -----------------------------

def ufm2_forward(params, tabular_input, input_ids, *, block_b=16, compute_attn=True):
    """Fused UFM2 forward. Returns (head_out (B,1), attn_weights (B,S) or None)."""
    B, S = input_ids.shape
    V, D = params["embed"].shape
    T = tabular_input.shape[-1]
    H = params["b1"].shape[-1]
    assert S + 1 <= OUT_SLAB, "sequence must fit the 128-wide output slab"
    assert V * D * 4 <= 8 * 1024 * 1024, "small-vocab VMEM fast path only"  # TODO(synk): DMA path for OPT vocab

    block_b = min(block_b, B)
    assert B % block_b == 0, "batch must be divisible by the batch block"

    # Pad ids to the lane-dense slab width (padding token 0 is masked out of the softmax in-kernel).
    ids_pad = jnp.zeros((B, OUT_SLAB), jnp.int32).at[:, :S].set(input_ids.astype(jnp.int32))

    # Split W1 so concat([tabular, text_repr]) never materializes; w2 as a row vector for the VPU reduce.
    w1_tab = params["w1"][:T]                               # (T, H)
    w1_txt = params["w1"][T:]                               # (D, H)
    w2_row = params["w2"].reshape(1, H)                     # (H, 1) -> row vector (same element order)
    b2 = params["b2"].reshape(1, 1).astype(jnp.float32)     # (1, 1)

    in_specs = [
        pl.BlockSpec((block_b, OUT_SLAB), lambda i: (i, 0)),   # padded token ids (batch-tiled, lane-dense)
        pl.BlockSpec((block_b, T), lambda i: (i, 0)),          # tabular features (batch-tiled)
        pl.BlockSpec((V, D), lambda i: (0, 0)),                # embedding table, VMEM resident
    ]
    args = [ids_pad, tabular_input.astype(jnp.float32), params["embed"].astype(jnp.float32)]
    if compute_attn:
        # Precompute the per-vocab attention logit once (cheap XLA matvec); softmax bias folds in here.
        logit_tab = (jnp.dot(params["embed"], params["attn_w"].reshape(D, 1),
                             precision=jax.lax.Precision.HIGHEST)
                     + params["attn_b"].reshape(1, 1)).astype(jnp.float32)     # (V, 1)
        in_specs.append(pl.BlockSpec((V, 1), lambda i: (0, 0)))
        args.append(logit_tab)
    in_specs += [
        pl.BlockSpec((T, H), lambda i: (0, 0)),                # W1, tabular half
        pl.BlockSpec((D, H), lambda i: (0, 0)),                # W1, text half
        pl.BlockSpec((1, H), lambda i: (0, 0)),                # b1
        pl.BlockSpec((1, H), lambda i: (0, 0)),                # w2 row
        pl.BlockSpec((1, 1), lambda i: (0, 0)),                # b2
    ]
    args += [w1_tab, w1_txt, params["b1"].astype(jnp.float32), w2_row.astype(jnp.float32), b2]

    slab = pl.pallas_call(
        functools.partial(fused_ufm2_kernel, compute_attn=compute_attn, seq_len=S),
        out_shape=jax.ShapeDtypeStruct((B, OUT_SLAB), jnp.float32),
        grid=(B // block_b,),
        in_specs=in_specs,
        out_specs=pl.BlockSpec((block_b, OUT_SLAB), lambda i: (i, 0)),
        compiler_params=pltpu.CompilerParams(
            dimension_semantics=("parallel",),      # batch blocks shard across TensorCores (v7x megacore)
            vmem_limit_bytes=32 * 1024 * 1024,      # <= v7x's 64 MiB physical VMEM; safe everywhere
        ),
    )(*args)

    if compute_attn:
        return slab[:, S:S + 1], slab[:, :S]
    return slab[:, 0:1], None


# ----------------------------- pure-JAX reference -----------------------------

def ufm2_reference(params, tabular_input, input_ids):
    emb = jnp.take(params["embed"], input_ids, axis=0)                         # (B, S, D)
    logits = jnp.sum(emb * params["attn_w"].reshape(1, 1, -1), axis=-1) + params["attn_b"][0]
    attn = jax.nn.softmax(logits, axis=-1)
    text = emb[:, 0, :]
    x = jnp.concatenate([tabular_input, text], axis=-1)
    h = jnp.maximum(x @ params["w1"] + params["b1"], 0.0)
    out = h @ params["w2"] + params["b2"]
    return out, attn


# ----------------------------- parameter init (synthetic, deterministic) -----------------------------

def init_params(key, vocab, embed_dim, tab_dim, hidden):
    k = jax.random.split(key, 6)
    in_dim = tab_dim + embed_dim
    return {
        "embed":  jax.random.normal(k[0], (vocab, embed_dim), jnp.float32) * 0.02,
        "attn_w": jax.random.normal(k[1], (1, embed_dim), jnp.float32) * (embed_dim ** -0.5),
        "attn_b": jax.random.normal(k[2], (1,), jnp.float32) * 0.1,
        "w1":     jax.random.normal(k[3], (in_dim, hidden), jnp.float32) * (in_dim ** -0.5),
        "b1":     jax.random.normal(k[4], (1, hidden), jnp.float32) * 0.1,
        "w2":     jax.random.normal(k[5], (hidden, 1), jnp.float32) * (hidden ** -0.5),
        "b2":     jnp.ones((1,), jnp.float32) * 0.05,
    }


# ----------------------------- main -----------------------------

if __name__ == "__main__":
    B, S, D = 64, 8, 128      # batch, seq, embed_dim (OPT-125m uses 768; scaled to one lane width)
    VOCAB = 64
    TAB_DIM = 16              # tabular_input_dim
    HIDDEN = 32

    key = jax.random.PRNGKey(0)
    kp, kt, ki = jax.random.split(key, 3)

    params = init_params(kp, VOCAB, D, TAB_DIM, HIDDEN)
    tabular_input = jax.random.normal(kt, (B, TAB_DIM), jnp.float32)
    input_ids = jax.random.randint(ki, (B, S), 0, VOCAB, dtype=jnp.int32)

    # Full path: attention computed (as the torch module does internally) + reasoning-head output.
    # block_b=16, grid=4 -> >= 2 steps per TensorCore on v7x, 4 steps on single-TC parts.
    out, attn_weights = ufm2_forward(params, tabular_input, input_ids, block_b=16, compute_attn=True)
    jax.block_until_ready(out)
    jax.block_until_ready(attn_weights)

    # Fast path: statically skips the discarded attention stage entirely.
    out_fast, _ = ufm2_forward(params, tabular_input, input_ids, block_b=16, compute_attn=False)
    jax.block_until_ready(out_fast)

    out_ref, attn_ref = ufm2_reference(params, tabular_input, input_ids)

    assert out.shape == (B, 1) and attn_weights.shape == (B, S)
    assert bool(jnp.all(jnp.isfinite(out))) and bool(jnp.all(jnp.isfinite(attn_weights)))
    assert jnp.allclose(jnp.sum(attn_weights, axis=-1), 1.0, atol=1e-4)
    assert jnp.allclose(attn_weights, attn_ref, rtol=5e-2, atol=2e-3)
    assert jnp.allclose(out, out_ref, rtol=5e-2, atol=1e-2)
    assert jnp.allclose(out_fast, out, rtol=1e-4, atol=1e-5)
    print("KERNEL_OK")
</pallas_src>

<mosaic_0001>
module attributes {stable_mosaic.version = 11 : i64} {
  func.func @fused_ufm2_kernel(%arg0: i32, %arg1: memref<16x128xi32, #tpu.memory_space<vmem>>, %arg2: memref<16x16xf32, #tpu.memory_space<vmem>>, %arg3: memref<64x128xf32, #tpu.memory_space<vmem>>, %arg4: memref<64x1xf32, #tpu.memory_space<vmem>>, %arg5: memref<16x32xf32, #tpu.memory_space<vmem>>, %arg6: memref<128x32xf32, #tpu.memory_space<vmem>>, %arg7: memref<1x32xf32, #tpu.memory_space<vmem>>, %arg8: memref<1x32xf32, #tpu.memory_space<vmem>>, %arg9: memref<1x1xf32, #tpu.memory_space<vmem>>, %arg10: memref<16x128xf32, #tpu.memory_space<vmem>>) attributes {dimension_semantics = [#tpu.dimension_semantics<parallel>], iteration_bounds = array<i64: 4>, scalar_prefetch = 0 : i64, scratch_operands = 0 : i64, tpu.core_type = #tpu.core_type<tc>, window_params = [{transform_indices = @transform_0, window_bounds = array<i64: 16, 128>}, {transform_indices = @transform_1, window_bounds = array<i64: 16, 16>}, {pipeline_mode = #tpu.pipeline_mode<synchronous>, transform_indices = @transform_2, window_bounds = array<i64: 64, 128>}, {pipeline_mode = #tpu.pipeline_mode<synchronous>, transform_indices = @transform_3, window_bounds = array<i64: 64, 1>}, {pipeline_mode = #tpu.pipeline_mode<synchronous>, transform_indices = @transform_4, window_bounds = array<i64: 16, 32>}, {pipeline_mode = #tpu.pipeline_mode<synchronous>, transform_indices = @transform_5, window_bounds = array<i64: 128, 32>}, {pipeline_mode = #tpu.pipeline_mode<synchronous>, transform_indices = @transform_6, window_bounds = array<i64: 1, 32>}, {pipeline_mode = #tpu.pipeline_mode<synchronous>, transform_indices = @transform_7, window_bounds = array<i64: 1, 32>}, {pipeline_mode = #tpu.pipeline_mode<synchronous>, transform_indices = @transform_8, window_bounds = array<i64: 1, 1>}, {transform_indices = @transform_9, window_bounds = array<i64: 16, 128>}]} {
    %c0 = arith.constant 0 : index
    %c0_0 = arith.constant 0 : index
    %0 = vector.load %arg1[%c0, %c0_0] : memref<16x128xi32, #tpu.memory_space<vmem>>, vector<16x128xi32>
    %1 = tpu.iota {dimensions = array<i32: 1>} : vector<16x64xi32>
    %2 = vector.extract_strided_slice %0 {offsets = [0, 0], sizes = [16, 1], strides = [1, 1]} : vector<16x128xi32> to vector<16x1xi32>
    %3 = vector.broadcast %2 : vector<16x1xi32> to vector<16x64xi32>
    %4 = arith.cmpi eq, %3, %1 : vector<16x64xi32>
    %5 = arith.extui %4 : vector<16x64xi1> to vector<16x64xi32>
    %6 = arith.sitofp %5 : vector<16x64xi32> to vector<16x64xf32>
    %c0_1 = arith.constant 0 : index
    %c0_2 = arith.constant 0 : index
    %7 = vector.load %arg3[%c0_1, %c0_2] : memref<64x128xf32, #tpu.memory_space<vmem>>, vector<64x128xf32>
    %cst = arith.constant dense<0.000000e+00> : vector<16x128xf32>
    %8 = tpu.matmul %6, %7, %cst {dimension_numbers = #tpu.dot_dimension_numbers<[1], [0], [0], [1], [0, 0, 1, 1], [], []>} : vector<16x64xf32>, vector<64x128xf32>, vector<16x128xf32> -> vector<16x128xf32>
    %c0_3 = arith.constant 0 : index
    %c0_4 = arith.constant 0 : index
    %9 = vector.load %arg2[%c0_3, %c0_4] : memref<16x16xf32, #tpu.memory_space<vmem>>, vector<16x16xf32>
    %c0_5 = arith.constant 0 : index
    %c0_6 = arith.constant 0 : index
    %10 = vector.load %arg5[%c0_5, %c0_6] : memref<16x32xf32, #tpu.memory_space<vmem>>, vector<16x32xf32>
    %cst_7 = arith.constant dense<0.000000e+00> : vector<16x32xf32>
    %11 = tpu.matmul %9, %10, %cst_7 {dimension_numbers = #tpu.dot_dimension_numbers<[1], [0], [0], [1], [0, 0, 1, 1], [], []>} : vector<16x16xf32>, vector<16x32xf32>, vector<16x32xf32> -> vector<16x32xf32>
    %c0_8 = arith.constant 0 : index
    %c0_9 = arith.constant 0 : index
    %12 = vector.load %arg6[%c0_8, %c0_9] : memref<128x32xf32, #tpu.memory_space<vmem>>, vector<128x32xf32>
    %cst_10 = arith.constant dense<0.000000e+00> : vector<16x32xf32>
    %13 = tpu.matmul %8, %12, %cst_10 {dimension_numbers = #tpu.dot_dimension_numbers<[1], [0], [0], [1], [0, 0, 1, 1], [], []>} : vector<16x128xf32>, vector<128x32xf32>, vector<16x32xf32> -> vector<16x32xf32>
    %14 = arith.addf %11, %13 : vector<16x32xf32>
    %c0_11 = arith.constant 0 : index
    %c0_12 = arith.constant 0 : index
    %15 = vector.load %arg7[%c0_11, %c0_12] : memref<1x32xf32, #tpu.memory_space<vmem>>, vector<1x32xf32>
    %16 = vector.broadcast %15 : vector<1x32xf32> to vector<16x32xf32>
    %17 = arith.addf %14, %16 : vector<16x32xf32>
    %cst_13 = arith.constant 0.000000e+00 : f32
    %18 = vector.broadcast %cst_13 : f32 to vector<16x32xf32>
    %19 = arith.maximumf %17, %18 : vector<16x32xf32>
    %c0_14 = arith.constant 0 : index
    %c0_15 = arith.constant 0 : index
    %20 = vector.load %arg8[%c0_14, %c0_15] : memref<1x32xf32, #tpu.memory_space<vmem>>, vector<1x32xf32>
    %21 = vector.broadcast %20 : vector<1x32xf32> to vector<16x32xf32>
    %22 = arith.mulf %19, %21 : vector<16x32xf32>
    %cst_16 = arith.constant dense<0.000000e+00> : vector<16xf32>
    %23 = vector.multi_reduction <add>, %22, %cst_16 [1] : vector<16x32xf32> to vector<16xf32>
    %24 = vector.shape_cast %23 : vector<16xf32> to vector<16x1xf32>
    %c0_17 = arith.constant 0 : index
    %c0_18 = arith.constant 0 : index
    %25 = vector.load %arg9[%c0_17, %c0_18] : memref<1x1xf32, #tpu.memory_space<vmem>>, vector<1x1xf32>
    %26 = vector.broadcast %25 : vector<1x1xf32> to vector<16x1xf32>
    %27 = arith.addf %24, %26 : vector<16x1xf32>
    %28 = tpu.iota {dimensions = array<i32: 1>} : vector<16x128xi32>
    %29 = tpu.iota {dimensions = array<i32: 1>} : vector<16x64x128xi32>
    %30 = vector.shape_cast %0 : vector<16x128xi32> to vector<16x1x128xi32>
    %31 = vector.broadcast %30 : vector<16x1x128xi32> to vector<16x64x128xi32>
    %32 = arith.cmpi eq, %31, %29 : vector<16x64x128xi32>
    %33 = arith.extui %32 : vector<16x64x128xi1> to vector<16x64x128xi32>
    %34 = arith.sitofp %33 : vector<16x64x128xi32> to vector<16x64x128xf32>
    %c0_19 = arith.constant 0 : index
    %c0_20 = arith.constant 0 : index
    %35 = vector.load %arg4[%c0_19, %c0_20] : memref<64x1xf32, #tpu.memory_space<vmem>>, vector<64x1xf32>
    %36 = vector.shape_cast %35 : vector<64x1xf32> to vector<1x64x1xf32>
    %37 = vector.broadcast %36 : vector<1x64x1xf32> to vector<16x64x128xf32>
    %38 = arith.mulf %34, %37 : vector<16x64x128xf32>
    %cst_21 = arith.constant dense<0.000000e+00> : vector<16x128xf32>
    %39 = vector.multi_reduction <add>, %38, %cst_21 [1] : vector<16x64x128xf32> to vector<16x128xf32>
    %c8_i32 = arith.constant 8 : i32
    %40 = vector.broadcast %c8_i32 : i32 to vector<16x128xi32>
    %41 = arith.cmpi slt, %28, %40 : vector<16x128xi32>
    %cst_22 = arith.constant -1.000000e+30 : f32
    %42 = vector.broadcast %cst_22 : f32 to vector<16x128xf32>
    %43 = arith.select %41, %39, %42 : vector<16x128xi1>, vector<16x128xf32>
    %cst_23 = arith.constant dense<0xFF800000> : vector<16xf32>
    %44 = vector.multi_reduction <maximumf>, %43, %cst_23 [1] : vector<16x128xf32> to vector<16xf32>
    %45 = vector.shape_cast %44 : vector<16xf32> to vector<16x1xf32>
    %46 = vector.broadcast %45 : vector<16x1xf32> to vector<16x128xf32>
    %47 = arith.subf %43, %46 : vector<16x128xf32>
    %48 = math.exp %47 : vector<16x128xf32>
    %cst_24 = arith.constant dense<0.000000e+00> : vector<16xf32>
    %49 = vector.multi_reduction <add>, %48, %cst_24 [1] : vector<16x128xf32> to vector<16xf32>
    %50 = vector.shape_cast %49 : vector<16xf32> to vector<16x1xf32>
    %51 = vector.broadcast %50 : vector<16x1xf32> to vector<16x128xf32>
    %52 = arith.divf %48, %51 : vector<16x128xf32>
    %c8_i32_25 = arith.constant 8 : i32
    %53 = vector.broadcast %c8_i32_25 : i32 to vector<16x128xi32>
    %54 = arith.cmpi eq, %28, %53 : vector<16x128xi32>
    %55 = vector.shape_cast %27 : vector<16x1xf32> to vector<16x1xf32>
    %56 = vector.broadcast %55 : vector<16x1xf32> to vector<16x128xf32>
    %57 = arith.select %54, %56, %52 : vector<16x128xi1>, vector<16x128xf32>
    %c0_26 = arith.constant 0 : index
    %c0_27 = arith.constant 0 : index
    %58 = vector.load %arg10[%c0_26, %c0_27] : memref<16x128xf32, #tpu.memory_space<vmem>>, vector<16x128xf32>
    tpu.vector_store %arg10[%c0_26, %c0_27], %57 {strides = array<i32>} : memref<16x128xf32, #tpu.memory_space<vmem>>, vector<16x128xf32>,
    return
  }
  func.func @transform_0(%arg0: i32) -> (i32, i32) {
    %c0_i32 = arith.constant 0 : i32
    %c0_i32_0 = arith.constant 0 : i32
    return %arg0, %c0_i32 : i32, i32
  }
  func.func @transform_1(%arg0: i32) -> (i32, i32) {
    %c0_i32 = arith.constant 0 : i32
    %c0_i32_0 = arith.constant 0 : i32
    return %arg0, %c0_i32 : i32, i32
  }
  func.func @transform_2(%arg0: i32) -> (i32, i32) {
    %c0_i32 = arith.constant 0 : i32
    %c0_i32_0 = arith.constant 0 : i32
    %c0_i32_1 = arith.constant 0 : i32
    return %c0_i32, %c0_i32_0 : i32, i32
  }
  func.func @transform_3(%arg0: i32) -> (i32, i32) {
    %c0_i32 = arith.constant 0 : i32
    %c0_i32_0 = arith.constant 0 : i32
    %c0_i32_1 = arith.constant 0 : i32
    return %c0_i32, %c0_i32_0 : i32, i32
  }
  func.func @transform_4(%arg0: i32) -> (i32, i32) {
    %c0_i32 = arith.constant 0 : i32
    %c0_i32_0 = arith.constant 0 : i32
    %c0_i32_1 = arith.constant 0 : i32
    return %c0_i32, %c0_i32_0 : i32, i32
  }
  func.func @transform_5(%arg0: i32) -> (i32, i32) {
    %c0_i32 = arith.constant 0 : i32
    %c0_i32_0 = arith.constant 0 : i32
    %c0_i32_1 = arith.constant 0 : i32
    return %c0_i32, %c0_i32_0 : i32, i32
  }
  func.func @transform_6(%arg0: i32) -> (i32, i32) {
    %c0_i32 = arith.constant 0 : i32
    %c0_i32_0 = arith.constant 0 : i32
    %c0_i32_1 = arith.constant 0 : i32
    return %c0_i32, %c0_i32_0 : i32, i32
  }
  func.func @transform_7(%arg0: i32) -> (i32, i32) {
    %c0_i32 = arith.constant 0 : i32
    %c0_i32_0 = arith.constant 0 : i32
    %c0_i32_1 = arith.constant 0 : i32
    return %c0_i32, %c0_i32_0 : i32, i32
  }
  func.func @transform_8(%arg0: i32) -> (i32, i32) {
    %c0_i32 = arith.constant 0 : i32
    %c0_i32_0 = arith.constant 0 : i32
    %c0_i32_1 = arith.constant 0 : i32
    return %c0_i32, %c0_i32_0 : i32, i32
  }
  func.func @transform_9(%arg0: i32) -> (i32, i32) {
    %c0_i32 = arith.constant 0 : i32
    %c0_i32_0 = arith.constant 0 : i32
    return %arg0, %c0_i32 : i32, i32
  }
}

</mosaic_0001>

<bundles_post_ra>
// kernel: tpu_custom_call.1
= control target key start
LH: loop header
LB: loop body
LE: loop exit
PB: predicated region body
PF: predicated region fallthrough
CT: control target
= control target key end

     0   :  { %s3622_s0 = inlined_call_operand.vmem [shape: s32[64,128], index: 0, kind: input, shape index: {}]   ;;  %s3623_s1 = inlined_call_operand.vmem [shape: f32[64,16], index: 1, kind: input, shape index: {}]   ;;  %s3624_s2 = inlined_call_operand.vmem [shape: f32[64,128], index: 2, kind: input, shape index: {}]   ;;  %s3625_s3 = inlined_call_operand.vmem [shape: f32[64,1], index: 3, kind: input, shape index: {}]   ;;  %s3626_s4 = inlined_call_operand.vmem [shape: f32[16,32], index: 4, kind: input, shape index: {}]   ;;  %s3627_s5 = inlined_call_operand.vmem [shape: f32[128,32], index: 5, kind: input, shape index: {}]   ;;  %s3628_s6 = inlined_call_operand.vmem [shape: f32[1,32], index: 6, kind: input, shape index: {}]   ;;  %s3629_s7 = inlined_call_operand.vmem [shape: f32[1,32], index: 7, kind: input, shape index: {}]   ;;  %s3630_s8 = inlined_call_operand.<no memory space> [shape: f32[1,1], index: 8, kind: input, shape index: {}]   ;;  %s3631_s9 = inlined_call_operand.hbm [shape: f32[64,128], index: 9, kind: output, shape index: {}]  }
   0x1   :  { %v14_v0 = vstv %s3630_s8 }
   0x2   :  { %15 = vst [vmem:[#allocation2] sm:$0x1] %v14_v0 }
   0x3   :  { %16 = vsyncpa [#allocation4], 0 }
   0x4   :  { %18 = vsyncpa [#allocation4 + $0x1], 0  ;;  %s1853_s11 = smov 0   ;;  %s1855_s12 = smov 0  }
   0x5   :  { %s1857_s13 = smov 0   ;;  %s1859_s14 = smov 0  }
   0x6 LB: > { %s1874_s8 = sadd.s32 4294967295, %s1794_s14   ;;  %s1510_s15 = sadd.s32 4294967294, %s1794_s14   ;;  %s1794_s14 = sphi %s1859_s14, %s3933_s14   ;;  %s1790_s13 = sphi %s1857_s13, %s3932_s13   ;;  %s1786_s12 = sphi %s1855_s12, %s3931_s12   ;;  %s1782_s11 = sphi %s1853_s11, %s3930_s11  }
   0x7   : > { %s1878_s16 = sadd.s32 1, %s1794_s14   ;;  %s230_s17 = sadd.s32 1, %s1790_s13 }
   0x8   : > { %s227_s18 = ssub.s32 %s1794_s14, %s1878_s16  ;;  %p240_p0 = scmp.ne.s32.totalorder %s1790_s13, %s1786_s12 }
   0x9   : > { %p228_p1 = scmp.eq.s32.totalorder %s227_s18, 0  ;;  %p241_p2 = scmp.eq.s32.totalorder %s1874_s8, 3 }
   0xa   : > { %p246_p3 = scmp.ne.s32.totalorder %s1786_s12, %s1782_s11  ;;  %p247_p4 = scmp.eq.s32.totalorder %s1510_s15, 3 }
   0xb   : > { %s1889_s19 = scalar_select %p228_p1, %s1790_s13, %s230_s17  }
   0xc   : > { %p1891_p5 = por %p241_p2, %p240_p0  ;;  %p1895_p6 = por %p247_p4, %p246_p3 }
   0xd   : > { %p1513_p7 = scmp.ge.s32.totalorder %s1794_s14, 1  ;;  %p304_p8 = scmp.lt.s32.totalorder %s1794_s14, 5 }
   0xf   : > { %p305_p9 = pnand %p1513_p7, %p304_p8 }
  0x11   : > { %308 = sbr.rel (%p305_p9) target bundleno = 668 (0x29c), region = 56 }
  0x16   : > { %s1515_s22 = sshll.u32 %s1874_s8, 1  ;;  %v935_v1 = vld [vmem:[%s3625_s3] sm:$0xff]  ;;  %v1796_v2 = vmov 0   ;;  %v937_v3 = vld [vmem:[%s3625_s3 + $0x10] sm:$0xff]  ;;  %v381_v4 = vld [vmem:[%s3624_s2 + $0x38] sm:$0xff]  ;;  %v360_v20 = vlaneseq  ;;  %v3650_v47 = vmov 0.0  }
  0x17   : > { %1718 = vset.pattern.permute.xlu0 %v1796_v2  ;;  %p346_p10 = scmp.lt.s32.totalorder %s1515_s22, 7  ;;  %1719 = vset.pattern.permute.xlu1 %v1796_v2  ;;  %v380_v5 = vld [vmem:[%s3624_s2 + $0x30] sm:$0xff]  ;;  %v379_v6 = vld [vmem:[%s3624_s2 + $0x28] sm:$0xff]  ;;  %v378_v7 = vld [vmem:[%s3624_s2 + $0x20] sm:$0xff] }
  0x18   : > { %945 = vperm.xlu1 %1719, %v935_v1   ;;  %1720 = vset.pattern.permute.xlu2 %v1796_v2  ;;  %v936_v9 = vld [vmem:[%s3625_s3 + $0x8] sm:$0xff]  ;;  %v938_v10 = vld [vmem:[%s3625_s3 + $0x18] sm:$0xff]  ;;  %v376_v12 = vld [vmem:[%s3624_s2 + $0x10] sm:$0xff]  ;;  %v1961_v22 = vshrl.u32 %v360_v20, 7  ;;  %v1976_v35 = vand.u32 127, %v360_v20 }
  0x19   : > { %s3935_s22 = smov (!%p346_p10, %s1515_s22), 7  ;;  %955 = vperm.xlu2 %1720, %v937_v3   ;;  %397 = vmatpush.msra.mxu0 %v381_v4  ;;  %v377_v11 = vld [vmem:[%s3624_s2 + $0x18] sm:$0xff]  ;;  %v375_v13 = vld [vmem:[%s3624_s2 + $0x8] sm:$0xff]  ;;  %v941_v16 = vld [vmem:[%s3625_s3 + $0x30] sm:$0xff] }
  0x1a   : > { %s1516_s17 = sshll.u32 %s3935_s22, 3  ;;  %v940_v15 = vld [vmem:[%s3625_s3 + $0x28] sm:$0xff]  ;;  %v939_v17 = vld [vmem:[%s3625_s3 + $0x20] sm:$0xff]  ;;  %v942_v18 = vld [vmem:[%s3625_s3 + $0x38] sm:$0xff]  ;;  %3683 = vst [vmem:[#allocation7_spill] sm:$0xff] %v1961_v22  ;;  %v1968_v31 = vadd.s32 8, %v1961_v22 }
  0x1b   : > { %398 = vmatpush.msra.mxu0 %v380_v5  ;;  %s349_s24 = scalar_lea.vmem %s3622_s0, %s1516_s17  ;;  %v374_v19 = vld [vmem:[%s3624_s2] sm:$0xff]  ;;  %3685 = vst [vmem:[#allocation9_spill] sm:$0xff] %v1976_v35  ;;  %v1979_v36 = vadd.s32 16, %v1961_v22  ;;  %v1988_v40 = vadd.s32 24, %v1961_v22  ;;  %v1991_v41 = vadd.s32 32, %v1961_v22  ;;  %v2000_v42 = vadd.s32 40, %v1961_v22  ;;  %s3544_s15 = scalar_lea.vmem %s3623_s1, %s1516_s17 }
  0x1c   : > { %v1928_v8 = vld [vmem:[%s349_s24] sm:$0xff]  ;;  %v359_v14 = vld [vmem:[%s349_s24 + $0x8] sm:$0xff]  ;;  %3684 = vst [vmem:[#allocation8_spill] sm:$0xff] %v1968_v31  ;;  %v2009_v43 = vadd.s32 48, %v1961_v22  ;;  %v2020_v45 = vadd.s32 56, %v1961_v22  ;;  %s342_s24 = sand.u32 1, %s1786_s12  }
  0x1d   : > { %3682 = vst [vmem:[#allocation6_spill] sm:$0xff] %v1928_v8  ;;  %399 = vmatpush.msra.mxu0 %v379_v6  ;;  %363 = vperm.xlu0 %1718, %v1928_v8   ;;  %v528_v21 = vrot.slane %v359_v14, 1  ;;  %v529_v23 = vrot.slane %v359_v14, 2  ;;  %v530_v24 = vrot.slane %v359_v14, 3  ;;  %v531_v25 = vrot.slane %v359_v14, 4  ;;  %s1514_s22 = sshll.u32 %s342_s24, 4 }
  0x1e   : > { %v532_v26 = vrot.slane %v359_v14, 5  ;;  %v533_v27 = vrot.slane %v359_v14, 6  ;;  %v534_v28 = vrot.slane %v359_v14, 7  ;;  %v1963_v29 = vperm.slane %v359_v14, 0  ;;  %3686 = vst [vmem:[#allocation10_spill] sm:$0xff] %v1979_v36  ;;  %s1658_s17 = sshll.u32 %s1874_s8, 4 }
  0x1f   : > { %400 = vmatpush.msra.mxu0 %v378_v7  ;;  %v1965_v30 = vperm.slane %v528_v21, 0  ;;  %v1970_v32 = vperm.slane %v529_v23, 0  ;;  %v1972_v33 = vperm.slane %v530_v24, 0  ;;  %v1974_v34 = vperm.slane %v531_v25, 0  ;;  %3687 = vst [vmem:[#allocation11_spill] sm:$0xff] %v1988_v40  ;;  %s344_s23 = scalar_lea.vmem [#allocation3], %s1514_s22  ;;  %s1432_s27 = scalar_lea.hbm %s3631_s9, %s1658_s17 }
  0x20   : > { %950 = vperm.xlu1 %1719, %v936_v9   ;;  %v1981_v37 = vperm.slane %v532_v26, 0  ;;  %v1983_v38 = vperm.slane %v533_v27, 0  ;;  %v1985_v39 = vperm.slane %v534_v28, 0  ;;  %3688 = vst [vmem:[#allocation12_spill] sm:$0xff] %v1991_v41  ;;  %vm615_vm0 = vcmp.eq.s32.totalorder %v1963_v29, %v1961_v22  ;;  %s1433_s28 = sshll.u32 %s344_s23, 4  ;;  %s1435_s29 = sshll.u32 %s1432_s27, 4  ;;  %s1434_s28 = int_to_ptr.vmem [resolvable:$true] %s1433_s28  ;;  %s1436_s29 = int_to_ptr.hbm [resolvable:$true] %s1435_s29 }
  0x21   : > { %960 = vperm.xlu2 %1720, %v938_v10   ;;  %401 = vmatpush.msra.mxu0 %v377_v11  ;;  %vm616_vm1 = vcmp.eq.s32.totalorder %v1963_v29, %v1968_v31  ;;  %vm623_vm2 = vcmp.eq.s32.totalorder %v1965_v30, %v1961_v22  ;;  %3689 = vst [vmem:[#allocation13_spill] sm:$0xff] %v2000_v42  ;;  %v2098_v48 = vsel %vm615_vm0, 1.0, %v3650_v47  ;;  %s1421_s8 = scalar_lea.sflag [#allocation4], %s342_s24  ;;  %s1746_s30 = sshra.s32 %s1436_s29, 4  ;;  %s1747_s30 = int_to_ptr.hbm [resolvable:$true] %s1746_s30 }
  0x22   : > { %vm624_vm3 = vcmp.eq.s32.totalorder %v1965_v30, %v1968_v31  ;;  %3690 = vst [vmem:[#allocation14_spill] sm:$0xff] %v2009_v43  ;;  %vm617_vm6 = vcmp.eq.s32.totalorder %v1963_v29, %v1979_v36  ;;  %vm618_vm9 = vcmp.eq.s32.totalorder %v1963_v29, %v1988_v40  ;;  %vm619_vm14 = vcmp.eq.s32.totalorder %v1963_v29, %v1991_v41  ;;  %s1748_s10 = scalar_lea.hbm %s1747_s30, 16  ;;  %s1752_s22 = scalar_lea.hbm %s3631_s9, 64 }
  0x23   : > { %402 = vmatpush.msra.mxu0 %v376_v12  ;;  %3692 = vst [vmem:[#allocation16_spill] sm:$0xff] %v2020_v45  ;;  %vm620_vm13 = vcmp.eq.s32.totalorder %v1963_v29, %v2000_v42  ;;  %vm621_vm5 = vcmp.eq.s32.totalorder %v1963_v29, %v2009_v43  ;;  %vm622_vm11 = vcmp.eq.s32.totalorder %v1963_v29, %v2020_v45  ;;  %v2104_v49 = vsel %vm616_vm1, 1.0, %v3650_v47  ;;  %p1749_p11 = scmp.ne.s32.totalorder %s1747_s30, %s1748_s10  ;;  %p1753_p0 = scmp.lt.s32.totalorder %s1747_s30, %s3631_s9 }
  0x24   : > { %vm646_vm8 = vcmp.eq.s32.totalorder %v1972_v33, %v2020_v45  ;;  %vm654_vm12 = vcmp.eq.s32.totalorder %v1974_v34, %v2020_v45  ;;  %vm659_vm4 = vcmp.eq.s32.totalorder %v1981_v37, %v1991_v41  ;;  %vm660_vm15 = vcmp.eq.s32.totalorder %v1981_v37, %v2000_v42  ;;  %p1754_p1 = scmp.lt.s32.totalorder %s1752_s22, %s1748_s10 }
  0x25   : > { %403 = vmatpush.msra.mxu0 %v375_v13  ;;  %366 = vperm.xlu0 %1718, %v359_v14   ;;  %vm661_vm10 = vcmp.eq.s32.totalorder %v1981_v37, %v2009_v43  ;;  %vm662_vm7 = vcmp.eq.s32.totalorder %v1981_v37, %v2020_v45  ;;  %v2118_v50 = vsel %vm617_vm6, 1.0, %v3650_v47  ;;  %v2124_v51 = vsel %vm618_vm9, 1.0, %v3650_v47  ;;  %p1750_p12 = pnand %p1749_p11, %p1891_p5 }
  0x26   : > { %v2130_v52 = vsel %vm619_vm14, 1.0, %v3650_v47  ;;  %v2136_v53 = vsel %vm620_vm13, 1.0, %v3650_v47  ;;  %vm663_vm0 = vcmp.eq.s32.totalorder %v1983_v38, %v1961_v22  ;;  %vm664_vm1 = vcmp.eq.s32.totalorder %v1983_v38, %v1968_v31  ;;  %p1755_p2 = por %p1754_p1, %p1753_p0 }
  0x27   : > { %404 = vmatpush.msra.mxu0 %v374_v19  ;;  %vm665_vm6 = vcmp.eq.s32.totalorder %v1983_v38, %v1979_v36  ;;  %vm666_vm9 = vcmp.eq.s32.totalorder %v1983_v38, %v1988_v40  ;;  %v2150_v54 = vsel %vm621_vm5, 1.0, %v3650_v47  ;;  %v2156_v55 = vsel %vm622_vm11, 1.0, %v3650_v47  ;;  %p1751_p13 = pneg %p1750_p12 }
  0x28   : > { %970 = vperm.xlu1 %1719, %v940_v15   ;;  %3694 = vst [vmem:[#allocation18_spill] sm:$0xff] %v2156_v55  ;;  %v2162_v56 = vsel %vm623_vm2, 1.0, %v3650_v47  ;;  %v2168_v57 = vsel %vm624_vm3, 1.0, %v3650_v47  ;;  %vm667_vm5 = vcmp.eq.s32.totalorder %v1983_v38, %v1991_v41  ;;  %vm3695_vm2 = vcmp.eq.s32.totalorder %v1965_v30, %v1979_v36 }
  0x29   : > { %975 = vperm.xlu2 %1720, %v941_v16   ;;  %v2182_v58 = vsel %vm3695_vm2, 1.0, %v3650_v47  ;;  %vm3696_vm3 = vcmp.eq.s32.totalorder %v1965_v30, %v1988_v40  ;;  %vm3697_vm13 = vcmp.eq.s32.totalorder %v1965_v30, %v1991_v41  ;;  %vm3698_vm14 = vcmp.eq.s32.totalorder %v1965_v30, %v2000_v42  ;;  %p1756_p3 = pnand %p1755_p2, %p1751_p13 }
  0x2a   : > { %v2188_v59 = vsel %vm3696_vm3, 1.0, %v3650_v47  ;;  %v2194_v60 = vsel %vm3697_vm13, 1.0, %v3650_v47  ;;  %v2200_v61 = vsel %vm3698_vm14, 1.0, %v3650_v47  ;;  %vm3699_vm13 = vcmp.eq.s32.totalorder %v1965_v30, %v2009_v43 }
  0x2b   : > { %v2212_v62 = vsel %vm3699_vm13, 1.0, %v3650_v47  ;;  %vm3700_vm14 = vcmp.eq.s32.totalorder %v1965_v30, %v2020_v45  ;;  %vm3702_vm2 = vcmp.eq.s32.totalorder %v1970_v32, %v1961_v22  ;;  %vm3703_vm3 = vcmp.eq.s32.totalorder %v1970_v32, %v1968_v31 }
  0x2c   : > { %v2218_v63 = vsel %vm3700_vm14, 1.0, %v3650_v47  ;;  %v2224_v0 = vsel %vm3702_vm2, 1.0, %v3650_v47  ;;  %v2230_v1 = vsel %vm3703_vm3, 1.0, %v3650_v47  ;;  %vm3705_vm2 = vcmp.eq.s32.totalorder %v1970_v32, %v1979_v36 }
  0x2d   : > { %965 = vperm.xlu0 %1718, %v939_v17   ;;  %3701 = vst [vmem:[#allocation19_spill] sm:$0xff] %v2218_v63  ;;  %v2244_v3 = vsel %vm3705_vm2, 1.0, %v3650_v47  ;;  %vm3706_vm3 = vcmp.eq.s32.totalorder %v1970_v32, %v1988_v40  ;;  %vm3707_vm13 = vcmp.eq.s32.totalorder %v1970_v32, %v1991_v41  ;;  %vm3708_vm11 = vcmp.eq.s32.totalorder %v1970_v32, %v2000_v42 }
  0x2e   : > { %v2250_v4 = vsel %vm3706_vm3, 1.0, %v3650_v47  ;;  %v2256_v5 = vsel %vm3707_vm13, 1.0, %v3650_v47  ;;  %v2262_v6 = vsel %vm3708_vm11, 1.0, %v3650_v47  ;;  %vm3709_vm14 = vcmp.eq.s32.totalorder %v1970_v32, %v2009_v43 }
  0x2f   : > { %v2272_v9 = vsel %vm3709_vm14, 1.0, %v3650_v47  ;;  %vm3710_vm13 = vcmp.eq.s32.totalorder %v1970_v32, %v2020_v45  ;;  %vm3712_vm11 = vcmp.eq.s32.totalorder %v1972_v33, %v1961_v22  ;;  %vm3713_vm3 = vcmp.eq.s32.totalorder %v1972_v33, %v1968_v31 }
  0x30   : > { %v2278_v10 = vsel %vm3710_vm13, 1.0, %v3650_v47  ;;  %v2284_v11 = vsel %vm3712_vm11, 1.0, %v3650_v47  ;;  %v2290_v12 = vsel %vm3713_vm3, 1.0, %v3650_v47  ;;  %vm3714_vm2 = vcmp.eq.s32.totalorder %v1972_v33, %v1979_v36 }
  0x31   : > { %3711 = vst [vmem:[#allocation21_spill] sm:$0xff] %v2278_v10  ;;  %v2297_v13 = vsel %vm3714_vm2, 1.0, %v3650_v47  ;;  %vm3715_vm13 = vcmp.eq.s32.totalorder %v1972_v33, %v1988_v40  ;;  %vm3716_vm11 = vcmp.eq.s32.totalorder %v1972_v33, %v1991_v41  ;;  %vm3718_vm2 = vcmp.eq.s32.totalorder %v1972_v33, %v2000_v42 }
  0x32   : > { %v2303_v14 = vsel %vm3715_vm13, 1.0, %v3650_v47  ;;  %v2309_v15 = vsel %vm3716_vm11, 1.0, %v3650_v47  ;;  %vm3719_vm3 = vcmp.eq.s32.totalorder %v1972_v33, %v2009_v43  ;;  %v2330_v20 = vsel %vm646_vm8, 1.0, %v3650_v47 }
  0x33   : > { %v2324_v19 = vsel %vm3719_vm3, 1.0, %v3650_v47  ;;  %3720 = vst [vmem:[#allocation23_spill] sm:$0xff] %v2330_v20  ;;  %vm3722_vm13 = vcmp.eq.s32.totalorder %v1974_v34, %v1961_v22  ;;  %vm3723_vm11 = vcmp.eq.s32.totalorder %v1974_v34, %v1968_v31  ;;  %vm3725_vm8 = vcmp.eq.s32.totalorder %v1974_v34, %v1988_v40 }
  0x34   : > { %v2337_v21 = vsel %vm3722_vm13, 1.0, %v3650_v47  ;;  %v2343_v23 = vsel %vm3723_vm11, 1.0, %v3650_v47  ;;  %v2355_v25 = vsel %vm3725_vm8, 1.0, %v3650_v47  ;;  %vm3726_vm3 = vcmp.eq.s32.totalorder %v1974_v34, %v1991_v41 }
  0x35   : > { %980 = vperm.xlu0 %1718, %v942_v18   ;;  %v2318_v18 = vsel %vm3718_vm2, 1.0, %v3650_v47  ;;  %vm3724_vm2 = vcmp.eq.s32.totalorder %v1974_v34, %v1979_v36  ;;  %v2361_v26 = vsel %vm3726_vm3, 1.0, %v3650_v47  ;;  %vm3728_vm13 = vcmp.eq.s32.totalorder %v1974_v34, %v2009_v43 }
  0x36   : > { %v2349_v24 = vsel %vm3724_vm2, 1.0, %v3650_v47  ;;  %v2373_v28 = vsel %vm3728_vm13, 1.0, %v3650_v47  ;;  %v2379_v29 = vsel %vm654_vm12, 1.0, %v3650_v47  ;;  %vm3730_vm11 = vcmp.eq.s32.totalorder %v1981_v37, %v1961_v22 }
  0x37   : > { %3729 = vst [vmem:[#allocation24_spill] sm:$0xff] %v2379_v29  ;;  %v2385_v30 = vsel %vm3730_vm11, 1.0, %v3650_v47  ;;  %vm3731_vm2 = vcmp.eq.s32.totalorder %v1981_v37, %v1968_v31  ;;  %vm3732_vm8 = vcmp.eq.s32.totalorder %v1981_v37, %v1979_v36  ;;  %vm3733_vm12 = vcmp.eq.s32.totalorder %v1981_v37, %v1988_v40 }
  0x38   : > { %v2391_v32 = vsel %vm3731_vm2, 1.0, %v3650_v47  ;;  %v2397_v33 = vsel %vm3732_vm8, 1.0, %v3650_v47  ;;  %v2421_v8 = vsel %vm661_vm10, 1.0, %v3650_v47  ;;  %v2427_v29 = vsel %vm662_vm7, 1.0, %v3650_v47 }
  0x39   : > { %3734 = vst [vmem:[#allocation25_spill] sm:$0xff] %v2427_v29  ;;  %v2433_v20 = vsel %vm663_vm0, 1.0, %v3650_v47  ;;  %v2439_v10 = vsel %vm664_vm1, 1.0, %v3650_v47  ;;  %v2445_v63 = vsel %vm665_vm6, 1.0, %v3650_v47  ;;  %v2451_v37 = vsel %vm666_vm9, 1.0, %v3650_v47 }
  0x3a   : > { %3735 = vst [vmem:[#allocation26_spill] sm:$0xff] %v2439_v10  ;;  %v2457_v55 = vsel %vm667_vm5, 1.0, %v3650_v47  ;;  %vm3741_vm7 = vcmp.eq.s32.totalorder %v1983_v38, %v2009_v43  ;;  %vm3743_vm10 = vcmp.eq.s32.totalorder %v1983_v38, %v2020_v45  ;;  %vm3746_vm0 = vcmp.eq.s32.totalorder %v1985_v39, %v1961_v22 }
  0x3b   : > { %3736 = vst [vmem:[#allocation27_spill] sm:$0xff] %v2445_v63  ;;  %v2469_v63 = vsel %vm3741_vm7, 1.0, %v3650_v47  ;;  %vm3747_vm1 = vcmp.eq.s32.totalorder %v1985_v39, %v1968_v31  ;;  %vm3748_vm6 = vcmp.eq.s32.totalorder %v1985_v39, %v1979_v36  ;;  %vm3750_vm9 = vcmp.eq.s32.totalorder %v1985_v39, %v1988_v40 }
  0x3c   : > { %3737 = vst [vmem:[#allocation28_spill] sm:$0xff] %v2451_v37  ;;  %v2475_v37 = vsel %vm3743_vm10, 1.0, %v3650_v47  ;;  %v1648_v22 = vsel %vm3750_vm9, 1.0, %v3650_v47  ;;  %vm3751_vm5 = vcmp.eq.s32.totalorder %v1985_v39, %v1991_v41  ;;  %vm3752_vm3 = vcmp.eq.s32.totalorder %v1985_v39, %v2000_v42 }
  0x3d   : > { %3738 = vst [vmem:[#allocation29_spill] sm:$0xff] %v2457_v55  ;;  %v1649_v31 = vsel %vm3751_vm5, 1.0, %v3650_v47  ;;  %v2507_v36 = vsel %vm3752_vm3, 1.0, %v3650_v47  ;;  %vm3754_vm13 = vcmp.eq.s32.totalorder %v1985_v39, %v2009_v43  ;;  %vm3755_vm11 = vcmp.eq.s32.totalorder %v1985_v39, %v2020_v45 }
  0x3e   : > { %3742 = vst [vmem:[#allocation31_spill] sm:$0xff] %v2469_v63  ;;  %v1646_v63 = vsel %vm3747_vm1, 1.0, %v3650_v47  ;;  %v2520_v41 = vsel %vm3755_vm11, 1.0, %v3650_v47  ;;  %vm3677_vm2 = vcmask 1041409   ;;  %vm3676_vm8 = vcmask 1042434  }
  0x3f   : > { %3744 = vst [vmem:[#allocation32_spill] sm:$0xff] %v2475_v37  ;;  %vm3673_vm7 = vcmask 1045509   ;;  %vm3672_vm10 = vcmask 1046534  }
  0x73   : > { %v2017_v44 = vpop.permute.xlu2 %955 }
  0x74   : > { %3691 = vst [vmem:[#allocation15_spill] sm:$0xff] %v2017_v44 }
  0x7b   : > { %v2232_v2 = vpop.permute.xlu2 %960 }
  0x7c   : > { %3704 = vst [vmem:[#allocation20_spill] sm:$0xff] %v2232_v2  ;;  %v2536_v43 = vmul.f32 %v2124_v51, %v2232_v2  ;;  %v2556_v51 = vmul.f32 %v2188_v59, %v2232_v2  ;;  %v2574_v59 = vmul.f32 %v2250_v4, %v2232_v2  ;;  %v2594_v4 = vmul.f32 %v2303_v14, %v2232_v2 }
  0x83   : > { %v2478_v55 = vpop.permute.xlu2 %975 }
  0x84   : > { %3745 = vst [vmem:[#allocation33_spill] sm:$0xff] %v2478_v55 }
  0x8a   : > { %v2080_v46 = vpop.permute.xlu1 %945 }
  0x8b   : > { %3693 = vst [vmem:[#allocation17_spill] sm:$0xff] %v2080_v46  ;;  %v2524_v40 = vmul.f32 %v2098_v48, %v2080_v46  ;;  %v2544_v48 = vmul.f32 %v2150_v54, %v2478_v55  ;;  %v2564_v54 = vmul.f32 %v2212_v62, %v2478_v55  ;;  %v2582_v62 = vmul.f32 %v2272_v9, %v2478_v55 }
  0x8d   : > { %3757 = vst [vmem:[#allocation36_spill] sm:$0xff] %v2544_v48 }
  0x8e   : > { %3759 = vst [vmem:[#allocation38_spill] sm:$0xff] %v2564_v54 }
  0x8f   : > { %v364_v7 = vpop.permute.xlu0 %363  ;;  %3761 = vst [vmem:[#allocation40_spill] sm:$0xff] %v2582_v62 }
  0x90   : > { %vm368_vm14 = vcmp.eq.s32.totalorder %v364_v7, %v1976_v35  ;;  %v2409_v7 = vsel %vm659_vm4, 1.0, %v3650_v47  ;;  %vm3739_vm4 = vcmp.eq.s32.totalorder %v1983_v38, %v2000_v42  ;;  %v1647_v38 = vsel %vm3748_vm6, 1.0, %v3650_v47 }
  0x91   : > { %v1519_v16 = vsel %vm368_vm14, 1.0, %v3650_v47  ;;  %vm3721_vm14 = vcmask 523264   ;;  %v2463_v10 = vsel %vm3739_vm4, 1.0, %v3650_v47  ;;  %vm3674_vm4 = vcmask 1044484  }
  0x92   : > { %v2312_v17 = vpop.permute.xlu1 %950  ;;  %1521 = vmatmul.msk.f32.vlgmr.msra.gmra.mxu0 %vm3721_vm14, %v1519_v16  ;;  %vm3727_vm14 = vcmp.eq.s32.totalorder %v1974_v34, %v2000_v42  ;;  %v2403_v34 = vsel %vm3733_vm12, 1.0, %v3650_v47  ;;  %v2415_v16 = vsel %vm660_vm15, 1.0, %v3650_v47  ;;  %3740 = vst [vmem:[#allocation30_spill] sm:$0xff] %v2463_v10  ;;  %v1645_v10 = vsel %vm3746_vm0, 1.0, %v3650_v47 }
  0x93   : > { %3717 = vst [vmem:[#allocation22_spill] sm:$0xff] %v2312_v17  ;;  %v2367_v27 = vsel %vm3727_vm14, 1.0, %v3650_v47  ;;  %vm3753_vm14 = vcmask 523264   ;;  %v2528_v42 = vmul.f32 %v2104_v49, %v2312_v17  ;;  %v1055_v49 = vmul.f32 %v2162_v56, %v2080_v46 }
  0x94   : > { %v1063_v56 = vmul.f32 %v2224_v0, %v2080_v46  ;;  %v1071_v0 = vmul.f32 %v2284_v11, %v2080_v46  ;;  %v1080_v14 = vmul.f32 %v2343_v23, %v2312_v17  ;;  %v1088_v23 = vmul.f32 %v2391_v32, %v2312_v17  ;;  %v3772_v32 = vld [vmem:[#allocation26_spill] sm:$0xff] }
  0x95   : > { %vm3675_vm12 = vcmask 1043459  }
  0x97   : > { %v367_v29 = vpop.permute.xlu0 %366 }
  0x98   : > { %vm369_vm15 = vcmp.eq.s32.totalorder %v367_v29, %v1976_v35  ;;  %v2514_v35 = vsel %vm3754_vm13, 1.0, %v3650_v47 }
  0x99   : > { %v1520_v37 = vsel %vm369_vm15, 1.0, %v3650_v47  ;;  %v1056_v47 = vmul.f32 %v2168_v57, %v2312_v17  ;;  %v1064_v57 = vmul.f32 %v2230_v1, %v2312_v17  ;;  %v1072_v1 = vmul.f32 %v2290_v12, %v2312_v17 }
  0x9a   : > { %v2493_v29 = vpop.permute.xlu1 %970  ;;  %1522 = vmatmul.msk.f32.gmra.mxu0 %vm3753_vm14, %v1520_v37  ;;  %v2532_v37 = vmul.f32 %v2118_v50, %v2017_v44  ;;  %v2552_v50 = vmul.f32 %v2182_v58, %v2017_v44  ;;  %v1065_v58 = vmul.f32 %v2244_v3, %v2017_v44  ;;  %v1073_v3 = vmul.f32 %v2297_v13, %v2017_v44 }
  0x9b   : > { %3749 = vst [vmem:[#allocation34_spill] sm:$0xff] %v2493_v29  ;;  %v2540_v39 = vmul.f32 %v2136_v53, %v2493_v29  ;;  %v2560_v53 = vmul.f32 %v2200_v61, %v2493_v29  ;;  %v2578_v61 = vmul.f32 %v2262_v6, %v2493_v29  ;;  %v2614_v13 = vmul.f32 %v2318_v18, %v2493_v29 }
  0x9c   : > { %v2632_v62 = vmul.f32 %v2367_v27, %v2493_v29  ;;  %v1092_v27 = vmul.f32 %v2415_v16, %v2493_v29  ;;  %v3776_v16 = vld [vmem:[#allocation30_spill] sm:$0xff]  ;;  %vm3671_vm15 = vcmask 1047559  }
  0x9d   : > { %3756 = vst [vmem:[#allocation35_spill] sm:$0xff] %v2540_v39 }
  0x9e   : > { %3758 = vst [vmem:[#allocation37_spill] sm:$0xff] %v2560_v53 }
  0x9f   : > { %3760 = vst [vmem:[#allocation39_spill] sm:$0xff] %v2578_v61  ;;  %v2584_v45 = vpop.permute.xlu0 %965 }
  0xa0   : > { %3762 = vst [vmem:[#allocation41_spill] sm:$0xff] %v2584_v45  ;;  %v2598_v6 = vmul.f32 %v2130_v52, %v2584_v45  ;;  %v2602_v9 = vmul.f32 %v2194_v60, %v2584_v45  ;;  %v2606_v11 = vmul.f32 %v2256_v5, %v2584_v45  ;;  %v2610_v12 = vmul.f32 %v2309_v15, %v2584_v45 }
  0xa1   : > { %3767 = vst [vmem:[#allocation46_spill] sm:$0xff] %v2614_v13  ;;  %v2618_v52 = vmul.f32 %v2324_v19, %v2478_v55  ;;  %v1079_v60 = vmul.f32 %v2337_v21, %v2080_v46  ;;  %v1081_v5 = vmul.f32 %v2349_v24, %v2017_v44  ;;  %v1082_v15 = vmul.f32 %v2355_v25, %v2232_v2 }
  0xa2   : > { %3763 = vst [vmem:[#allocation42_spill] sm:$0xff] %v2598_v6  ;;  %v1083_v18 = vmul.f32 %v2361_v26, %v2584_v45  ;;  %v2636_v19 = vmul.f32 %v2373_v28, %v2478_v55  ;;  %v1087_v21 = vmul.f32 %v2385_v30, %v2080_v46  ;;  %v1089_v24 = vmul.f32 %v2397_v33, %v2017_v44  ;;  %v3773_v33 = vld [vmem:[#allocation27_spill] sm:$0xff] }
  0xa3   : > { %3764 = vst [vmem:[#allocation43_spill] sm:$0xff] %v2602_v9  ;;  %v1090_v25 = vmul.f32 %v2403_v34, %v2232_v2  ;;  %v1091_v26 = vmul.f32 %v2409_v7, %v2584_v45  ;;  %v2652_v28 = vmul.f32 %v2421_v8, %v2478_v55  ;;  %v1095_v30 = vmul.f32 %v2433_v20, %v2080_v46  ;;  %v3774_v34 = vld [vmem:[#allocation28_spill] sm:$0xff]  ;;  %v3775_v7 = vld [vmem:[#allocation29_spill] sm:$0xff]  ;;  %v3777_v8 = vld [vmem:[#allocation31_spill] sm:$0xff] }
  0xa4   : > { %3765 = vst [vmem:[#allocation44_spill] sm:$0xff] %v2606_v11  ;;  %v1098_v54 = vmul.f32 %v3774_v34, %v2232_v2  ;;  %v1099_v48 = vmul.f32 %v3775_v7, %v2584_v45  ;;  %v1103_v20 = vmul.f32 %v1645_v10, %v2080_v46  ;;  %v1106_v34 = vmul.f32 %v1648_v22, %v2232_v2  ;;  %v3780_v7 = vld [vmem:[#allocation18_spill] sm:$0xff]  ;;  %v3783_v10 = vld [vmem:[#allocation23_spill] sm:$0xff] }
  0xa5   : > { %3766 = vst [vmem:[#allocation45_spill] sm:$0xff] %v2610_v12  ;;  %v1107_v61 = vmul.f32 %v1649_v31, %v2584_v45  ;;  %v3786_v31 = vld [vmem:[#allocation32_spill] sm:$0xff]  ;;  %v1228_v2 = vadd.f32 %v1056_v47, %v1055_v49  ;;  %v1267_v12 = vadd.f32 %v1080_v14, %v1079_v60  ;;  %v3792_v60 = vld [vmem:[#allocation37_spill] sm:$0xff] }
  0xa6   : > { %3768 = vst [vmem:[#allocation47_spill] sm:$0xff] %v2618_v52  ;;  %v1097_v52 = vmul.f32 %v3773_v33, %v2017_v44  ;;  %v1105_v33 = vmul.f32 %v1647_v38, %v2017_v44  ;;  %v3785_v38 = vld [vmem:[#allocation25_spill] sm:$0xff]  ;;  %v1254_v44 = vadd.f32 %v1072_v1, %v1071_v0 }
  0xa7   : > { %3769 = vst [vmem:[#allocation48_spill] sm:$0xff] %v2632_v62  ;;  %v1100_v62 = vmul.f32 %v3776_v16, %v2493_v29  ;;  %v2671_v13 = vpop.permute.xlu0 %980  ;;  %v3781_v16 = vld [vmem:[#allocation19_spill] sm:$0xff] }
  0xa8   : > { %3770 = vst [vmem:[#allocation49_spill] sm:$0xff] %v2636_v19  ;;  %v1096_v19 = vmul.f32 %v3772_v32, %v2312_v17  ;;  %v1104_v32 = vmul.f32 %v1646_v63, %v2312_v17  ;;  %v1054_v53 = vmul.f32 %v3780_v7, %v2671_v13  ;;  %v1062_v39 = vmul.f32 %v3781_v16, %v2671_v13  ;;  %v3784_v63 = vld [vmem:[#allocation24_spill] sm:$0xff]  ;;  %v3794_v14 = vld [vmem:[#allocation46_spill] sm:$0xff] }
  0xa9   : > { %3771 = vst [vmem:[#allocation50_spill] sm:$0xff] %v2652_v28  ;;  %v2668_v28 = vmul.f32 %v3777_v8, %v2478_v55  ;;  %v3782_v8 = vld [vmem:[#allocation21_spill] sm:$0xff]  ;;  %v1078_v46 = vmul.f32 %v3783_v10, %v2671_v13  ;;  %v1086_v17 = vmul.f32 %v3784_v63, %v2671_v13  ;;  %v1094_v22 = vmul.f32 %v3785_v38, %v2671_v13 }
  0xaa   : > { %3779 = vst [vmem:[#allocation27_spill] sm:$0xff] %v2671_v13  ;;  %v1102_v45 = vmul.f32 %v3786_v31, %v2671_v13  ;;  %v1108_v7 = vmul.f32 %v2507_v36, %v2493_v29  ;;  %v1109_v16 = vmul.f32 %v2514_v35, %v2478_v55  ;;  %v1215_v10 = vadd.f32 %v2528_v42, %v2524_v40 }
  0xab   : > { %3778 = vst [vmem:[#allocation26_spill] sm:$0xff] %v2668_v28  ;;  %v1070_v28 = vmul.f32 %v3782_v8, %v2671_v13  ;;  %v1110_v8 = vmul.f32 %v2520_v41, %v2671_v13  ;;  %v1241_v63 = vadd.f32 %v1064_v57, %v1063_v56  ;;  %v1280_v38 = vadd.f32 %v1088_v23, %v1087_v21  ;;  %v3787_v57 = vld [vmem:[#allocation42_spill] sm:$0xff]  ;;  %v3789_v1 = vld [vmem:[#allocation44_spill] sm:$0xff] }
  0xac   : > { %v1216_v11 = vadd.f32 %v1215_v10, %v2532_v37  ;;  %v1229_v31 = vadd.f32 %v1228_v2, %v2552_v50  ;;  %v1293_v9 = vadd.f32 %v1096_v19, %v1095_v30  ;;  %v1306_v36 = vadd.f32 %v1104_v32, %v1103_v20  ;;  %v3788_v50 = vld [vmem:[#allocation43_spill] sm:$0xff]  ;;  %v3796_v19 = vld [vmem:[#allocation36_spill] sm:$0xff]  ;;  %v3797_v23 = vld [vmem:[#allocation38_spill] sm:$0xff] }
  0xad   : > { %v1242_v29 = vadd.f32 %v1241_v63, %v1065_v58  ;;  %v1255_v6 = vadd.f32 %v1254_v44, %v1073_v3  ;;  %v1268_v35 = vadd.f32 %v1267_v12, %v1081_v5  ;;  %v1281_v55 = vadd.f32 %v1280_v38, %v1089_v24  ;;  %v3790_v12 = vld [vmem:[#allocation45_spill] sm:$0xff]  ;;  %v3799_v20 = vld [vmem:[#allocation47_spill] sm:$0xff] }
  0xae   : > { %v1217_v41 = vadd.f32 %v1216_v11, %v2536_v43  ;;  %v1230_v13 = vadd.f32 %v1229_v31, %v2556_v51  ;;  %v1294_v40 = vadd.f32 %v1293_v9, %v1097_v52  ;;  %v1307_v42 = vadd.f32 %v1306_v36, %v1105_v33  ;;  %v3791_v9 = vld [vmem:[#allocation35_spill] sm:$0xff] }
  0xaf   : > { %v1243_v47 = vadd.f32 %v1242_v29, %v2574_v59  ;;  %v1256_v49 = vadd.f32 %v1255_v6, %v2594_v4  ;;  %v1269_v56 = vadd.f32 %v1268_v35, %v1082_v15  ;;  %v1282_v37 = vadd.f32 %v1281_v55, %v1090_v25  ;;  %v3793_v6 = vld [vmem:[#allocation39_spill] sm:$0xff]  ;;  %v3795_v15 = vld [vmem:[#allocation48_spill] sm:$0xff]  ;;  %v3800_v33 = vld [vmem:[#allocation49_spill] sm:$0xff] }
  0xb0   : > { %v1218_v2 = vadd.f32 %v1217_v41, %v3787_v57  ;;  %v1231_v0 = vadd.f32 %v1230_v13, %v3788_v50  ;;  %v1295_v58 = vadd.f32 %v1294_v40, %v1098_v54  ;;  %v1308_v44 = vadd.f32 %v1307_v42, %v1106_v34 }
  0xb1   : > { %v1244_v3 = vadd.f32 %v1243_v47, %v3789_v1  ;;  %v1257_v43 = vadd.f32 %v1256_v49, %v3790_v12  ;;  %v1270_v11 = vadd.f32 %v1269_v56, %v1083_v18  ;;  %v1283_v51 = vadd.f32 %v1282_v37, %v1091_v26  ;;  %v3798_v26 = vld [vmem:[#allocation40_spill] sm:$0xff] }
  0xb2   : > { %v1219_v52 = vadd.f32 %v1218_v2, %v3791_v9  ;;  %v1232_v29 = vadd.f32 %v1231_v0, %v3792_v60  ;;  %v1296_v59 = vadd.f32 %v1295_v58, %v1099_v48  ;;  %v1309_v4 = vadd.f32 %v1308_v44, %v1107_v61  ;;  %v3801_v61 = vld [vmem:[#allocation50_spill] sm:$0xff] }
  0xb3   : > { %v1245_v55 = vadd.f32 %v1244_v3, %v3793_v6  ;;  %v1258_v5 = vadd.f32 %v1257_v43, %v3794_v14  ;;  %v1271_v13 = vadd.f32 %v1270_v11, %v3795_v15  ;;  %v1284_v54 = vadd.f32 %v1283_v51, %v1092_v27  ;;  %v3802_v38 = vld [vmem:[#allocation26_spill] sm:$0xff] }
  0xb4   : > { %v1220_v21 = vadd.f32 %v1219_v52, %v3796_v19  ;;  %v1233_v24 = vadd.f32 %v1232_v29, %v3797_v23  ;;  %v1297_v25 = vadd.f32 %v1296_v59, %v1100_v62  ;;  %v1310_v18 = vadd.f32 %v1309_v4, %v1108_v7 }
  0xb5   : > { %v1246_v30 = vadd.f32 %v1245_v55, %v3798_v26  ;;  %v1259_v32 = vadd.f32 %v1258_v5, %v3799_v20  ;;  %v1272_v48 = vadd.f32 %v1271_v13, %v3800_v33  ;;  %v1285_v34 = vadd.f32 %v1284_v54, %v3801_v61  ;;  %v3803_v54 = vld [vmem:[#allocation6_spill] sm:$0xff] }
  0xb6   : > { %v1221_v10 = vadd.f32 %v1220_v21, %v1054_v53  ;;  %v1234_v63 = vadd.f32 %v1233_v24, %v1062_v39  ;;  %v1298_v31 = vadd.f32 %v1297_v25, %v3802_v38  ;;  %v1311_v36 = vadd.f32 %v1310_v18, %v1109_v16 }
  0xb7   : > { %v1247_v27 = vadd.f32 %v1246_v30, %v1070_v28  ;;  %v1260_v35 = vadd.f32 %v1259_v32, %v1078_v46  ;;  %v1273_v41 = vadd.f32 %v1272_v48, %v1086_v17  ;;  %v1286_v40 = vadd.f32 %v1285_v34, %v1094_v22 }
  0xb8   : > { %v1222_v42 = vrot.slane %v1221_v10, 4  ;;  %v1235_v62 = vrot.slane %v1234_v63, 4  ;;  %v1299_v7 = vadd.f32 %v1298_v31, %v1102_v45  ;;  %v1312_v47 = vadd.f32 %v1311_v36, %v1110_v8 }
  0xb9   : > { %v1248_v49 = vrot.slane %v1247_v27, 4  ;;  %v1261_v56 = vrot.slane %v1260_v35, 4  ;;  %v1274_v37 = vrot.slane %v1273_v41, 4  ;;  %v1287_v57 = vrot.slane %v1286_v40, 4 }
  0xba   : > { %v1223_v2 = vadd.f32 %v1222_v42, %v1221_v10  ;;  %v1236_v50 = vadd.f32 %v1235_v62, %v1234_v63  ;;  %v1300_v0 = vrot.slane %v1299_v7, 4  ;;  %v1313_v53 = vrot.slane %v1312_v47, 4 }
  0xbb   : > { %v1249_v39 = vadd.f32 %v1248_v49, %v1247_v27  ;;  %v1262_v58 = vadd.f32 %v1261_v56, %v1260_v35  ;;  %v1275_v44 = vadd.f32 %v1274_v37, %v1273_v41  ;;  %v1288_v16 = vadd.f32 %v1287_v57, %v1286_v40  ;;  %v3804_v40 = vld [vmem:[#allocation9_spill] sm:$0xff] }
  0xbc   : > { %v1224_v28 = vrot.slane %v1223_v2, 2  ;;  %v1237_v46 = vrot.slane %v1236_v50, 2  ;;  %v1301_v17 = vadd.f32 %v1300_v0, %v1299_v7  ;;  %v1314_v22 = vadd.f32 %v1313_v53, %v1312_v47  ;;  %v3806_v53 = vld [vmem:[#allocation7_spill] sm:$0xff] }
  0xbd   : > { %v1250_v1 = vrot.slane %v1249_v39, 2  ;;  %v1263_v3 = vrot.slane %v1262_v58, 2  ;;  %v1276_v45 = vrot.slane %v1275_v44, 2  ;;  %v1289_v8 = vrot.slane %v1288_v16, 2 }
  0xbe   : > { %v1225_v12 = vadd.f32 %v1224_v28, %v1223_v2  ;;  %v1238_v43 = vadd.f32 %v1237_v46, %v1236_v50  ;;  %v1302_v11 = vrot.slane %v1301_v17, 2  ;;  %v1315_v51 = vrot.slane %v1314_v22, 2  ;;  %v3811_v28 = vld [vmem:[#allocation13_spill] sm:$0xff]  ;;  %v3812_v46 = vld [vmem:[#allocation14_spill] sm:$0xff] }
  0xbf   : > { %v1251_v9 = vadd.f32 %v1250_v1, %v1249_v39  ;;  %v1264_v52 = vadd.f32 %v1263_v3, %v1262_v58  ;;  %v1277_v60 = vadd.f32 %v1276_v45, %v1275_v44  ;;  %v1290_v4 = vadd.f32 %v1289_v8, %v1288_v16  ;;  %v3807_v39 = vld [vmem:[#allocation8_spill] sm:$0xff]  ;;  %v3808_v58 = vld [vmem:[#allocation10_spill] sm:$0xff]  ;;  %v3809_v44 = vld [vmem:[#allocation11_spill] sm:$0xff] }
  0xc0   : > { %v1226_v29 = vrot.slane %v1225_v12, 1  ;;  %v1239_v59 = vrot.slane %v1238_v43, 1  ;;  %v1303_v55 = vadd.f32 %v1302_v11, %v1301_v17  ;;  %v1316_v13 = vadd.f32 %v1315_v51, %v1314_v22  ;;  %v3810_v16 = vld [vmem:[#allocation12_spill] sm:$0xff] }
  0xc1   : > { %v1252_v6 = vrot.slane %v1251_v9, 1  ;;  %v1265_v15 = vrot.slane %v1264_v52, 1  ;;  %v521_v19 = vrot.slane %v3803_v54, 1  ;;  %v522_v21 = vrot.slane %v3803_v54, 2  ;;  %v3813_v17 = vld [vmem:[#allocation16_spill] sm:$0xff] }
  0xc2   : > { %v1227_v14 = vadd.f32 %v1226_v29, %v1225_v12  ;;  %v1240_v5 = vadd.f32 %v1239_v59, %v1238_v43  ;;  %v1278_v24 = vrot.slane %v1277_v60, 1  ;;  %v523_v25 = vrot.slane %v3803_v54, 3 }
  0xc3   : > { %v1253_v23 = vadd.f32 %v1252_v6, %v1251_v9  ;;  %v524_v18 = vrot.slane %v3803_v54, 4  ;;  %v1291_v26 = vrot.slane %v1290_v4, 1  ;;  %v525_v30 = vrot.slane %v3803_v54, 5 }
  0xc4   : > { %v1304_v20 = vrot.slane %v1303_v55, 1  ;;  %v1266_v32 = vadd.f32 %v1265_v15, %v1264_v52  ;;  %v1317_v33 = vrot.slane %v1316_v13, 1  ;;  %v1350_v48 = vsel %vm3677_vm2, %v1240_v5, %v1227_v14 }
  0xc5   : > { %v526_v61 = vrot.slane %v3803_v54, 6  ;;  %v1279_v34 = vadd.f32 %v1278_v24, %v1277_v60  ;;  %v1351_v10 = vsel %vm3676_vm8, %v1253_v23, %v1350_v48  ;;  %v527_v63 = vrot.slane %v3803_v54, 7 }
  0xc6   : > { %v1292_v38 = vadd.f32 %v1291_v26, %v1290_v4  ;;  %v1352_v31 = vsel %vm3675_vm12, %v1266_v32, %v1351_v10  ;;  %v2732_v36 = vperm.slane %v3803_v54, 0  ;;  %v1305_v27 = vadd.f32 %v1304_v20, %v1303_v55 }
  0xc7   : > { %v1353_v35 = vsel %vm3674_vm4, %v1279_v34, %v1352_v31  ;;  %v1318_v41 = vadd.f32 %v1317_v33, %v1316_v13  ;;  %vm3670_vm0 = vcmp.lt.s32.totalorder %v3804_v40, 8  ;;  %v2737_v62 = vperm.slane %v521_v19, 0 }
  0xc8   : > { %v1354_v42 = vsel %vm3673_vm7, %v1292_v38, %v1353_v35  ;;  %v2739_v7 = vperm.slane %v522_v21, 0  ;;  %v2741_v47 = vperm.slane %v523_v25, 0  ;;  %v2744_v56 = vperm.slane %v524_v18, 0 }
  0xc9   : > { %v1355_v49 = vsel %vm3672_vm10, %v1305_v27, %v1354_v42  ;;  %v2746_v37 = vperm.slane %v525_v30, 0  ;;  %v2748_v57 = vperm.slane %v526_v61, 0  ;;  %v2751_v50 = vperm.slane %v527_v63, 0 }
  0xca   : > { %v1356_v2 = vsel %vm3671_vm15, %v1318_v41, %v1355_v49  ;;  %vm551_vm1 = vcmp.eq.s32.totalorder %v2732_v36, %v3806_v53  ;;  %vm552_vm6 = vcmp.eq.s32.totalorder %v2732_v36, %v3807_v39  ;;  %vm553_vm9 = vcmp.eq.s32.totalorder %v2732_v36, %v3808_v58 }
  0xcb   : > { %v2755_v0 = vsel %vm3670_vm0, %v1356_v2, -1e+30  ;;  %vm554_vm5 = vcmp.eq.s32.totalorder %v2732_v36, %v3809_v44  ;;  %vm555_vm3 = vcmp.eq.s32.totalorder %v2732_v36, %v3810_v16  ;;  %vm556_vm14 = vcmp.eq.s32.totalorder %v2732_v36, %v3811_v28 }
  0xcc   : > { %3805 = vst [vmem:[#allocation28_spill] sm:$0xff] %v2755_v0  ;;  %1363 = vmax.xlane.f32.xlu2 %v2755_v0  ;;  %vm557_vm13 = vcmp.eq.s32.totalorder %v2732_v36, %v3812_v46  ;;  %vm558_vm11 = vcmp.eq.s32.totalorder %v2732_v36, %v3813_v17  ;;  %vm559_vm0 = vcmp.eq.s32.totalorder %v2737_v62, %v3806_v53  ;;  %v3814_v22 = vmov 0.0  }
  0xcd   : > { %vm590_vm7 = vcmp.eq.s32.totalorder %v2744_v56, %v3813_v17  ;;  %vm591_vm4 = vcmp.eq.s32.totalorder %v2746_v37, %v3806_v53  ;;  %vm592_vm12 = vcmp.eq.s32.totalorder %v2746_v37, %v3807_v39  ;;  %v2854_v1 = vsel %vm551_vm1, 1.0, %v3814_v22 }
  0xce   : > { %v2860_v3 = vsel %vm552_vm6, 1.0, %v3814_v22  ;;  %vm597_vm2 = vcmp.eq.s32.totalorder %v2746_v37, %v3812_v46  ;;  %vm598_vm15 = vcmp.eq.s32.totalorder %v2746_v37, %v3813_v17  ;;  %vm599_vm10 = vcmp.eq.s32.totalorder %v2748_v57, %v3806_v53 }
  0xcf   : > { %vm600_vm8 = vcmp.eq.s32.totalorder %v2748_v57, %v3807_v39  ;;  %v2874_v45 = vsel %vm553_vm9, 1.0, %v3814_v22  ;;  %v2880_v8 = vsel %vm554_vm5, 1.0, %v3814_v22  ;;  %v2886_v12 = vsel %vm555_vm3, 1.0, %v3814_v22 }
  0xd0   : > { %v2892_v43 = vsel %vm556_vm14, 1.0, %v3814_v22  ;;  %vm601_vm1 = vcmp.eq.s32.totalorder %v2748_v57, %v3808_v58  ;;  %vm602_vm6 = vcmp.eq.s32.totalorder %v2748_v57, %v3809_v44  ;;  %vm603_vm9 = vcmp.eq.s32.totalorder %v2748_v57, %v3810_v16 }
  0xd1   : > { %v2906_v11 = vsel %vm557_vm13, 1.0, %v3814_v22  ;;  %v2912_v51 = vsel %vm558_vm11, 1.0, %v3814_v22  ;;  %v2918_v9 = vsel %vm559_vm0, 1.0, %v3814_v22  ;;  %vm3815_vm3 = vcmp.eq.s32.totalorder %v2737_v62, %v3807_v39 }
  0xd2   : > { %v2924_v52 = vsel %vm3815_vm3, 1.0, %v3814_v22  ;;  %vm3816_vm0 = vcmp.eq.s32.totalorder %v2737_v62, %v3808_v58  ;;  %vm3817_vm3 = vcmp.eq.s32.totalorder %v2737_v62, %v3809_v44  ;;  %vm3818_vm13 = vcmp.eq.s32.totalorder %v2737_v62, %v3810_v16 }
  0xd3   : > { %v2938_v60 = vsel %vm3816_vm0, 1.0, %v3814_v22  ;;  %v2944_v29 = vsel %vm3817_vm3, 1.0, %v3814_v22  ;;  %v2950_v59 = vsel %vm3818_vm13, 1.0, %v3814_v22  ;;  %vm3819_vm5 = vcmp.eq.s32.totalorder %v2737_v62, %v3811_v28 }
  0xd4   : > { %v2956_v4 = vsel %vm3819_vm5, 1.0, %v3814_v22  ;;  %vm609_vm0 = vcmp.eq.s32.totalorder %v2751_v50, %v3808_v58  ;;  %vm3820_vm13 = vcmp.eq.s32.totalorder %v2737_v62, %v3812_v46  ;;  %vm3821_vm5 = vcmp.eq.s32.totalorder %v2737_v62, %v3813_v17 }
  0xd5   : > { %v2970_v6 = vsel %vm3820_vm13, 1.0, %v3814_v22  ;;  %v2976_v55 = vsel %vm3821_vm5, 1.0, %v3814_v22  ;;  %vm3822_vm11 = vcmp.eq.s32.totalorder %v2739_v7, %v3806_v53  ;;  %vm3823_vm14 = vcmp.eq.s32.totalorder %v2739_v7, %v3807_v39 }
  0xd6   : > { %v2982_v14 = vsel %vm3822_vm11, 1.0, %v3814_v22  ;;  %v2988_v5 = vsel %vm3823_vm14, 1.0, %v3814_v22  ;;  %vm613_vm13 = vcmp.eq.s32.totalorder %v2751_v50, %v3812_v46  ;;  %vm3824_vm5 = vcmp.eq.s32.totalorder %v2739_v7, %v3808_v58 }
  0xd7   : > { %v2998_v15 = vsel %vm3824_vm5, 1.0, %v3814_v22  ;;  %vm3825_vm11 = vcmp.eq.s32.totalorder %v2739_v7, %v3809_v44  ;;  %vm3826_vm14 = vcmp.eq.s32.totalorder %v2739_v7, %v3810_v16  ;;  %vm3827_vm3 = vcmp.eq.s32.totalorder %v2739_v7, %v3811_v28 }
  0xd8   : > { %v3004_v13 = vsel %vm3825_vm11, 1.0, %v3814_v22  ;;  %v3010_v54 = vsel %vm3826_vm14, 1.0, %v3814_v22  ;;  %v3016_v19 = vsel %vm3827_vm3, 1.0, %v3814_v22  ;;  %vm3828_vm5 = vcmp.eq.s32.totalorder %v2739_v7, %v3812_v46 }
  0xd9   : > { %v3022_v21 = vsel %vm3828_vm5, 1.0, %v3814_v22  ;;  %vm3829_vm11 = vcmp.eq.s32.totalorder %v2739_v7, %v3813_v17  ;;  %vm3830_vm14 = vcmp.eq.s32.totalorder %v2741_v47, %v3806_v53  ;;  %vm3831_vm3 = vcmp.eq.s32.totalorder %v2741_v47, %v3807_v39 }
  0xda   : > { %v3028_v23 = vsel %vm3829_vm11, 1.0, %v3814_v22  ;;  %v3034_v24 = vsel %vm3830_vm14, 1.0, %v3814_v22  ;;  %v3040_v25 = vsel %vm3831_vm3, 1.0, %v3814_v22  ;;  %vm3832_vm5 = vcmp.eq.s32.totalorder %v2741_v47, %v3808_v58 }
  0xdb   : > { %v3046_v18 = vsel %vm3832_vm5, 1.0, %v3814_v22  ;;  %vm3833_vm11 = vcmp.eq.s32.totalorder %v2741_v47, %v3809_v44  ;;  %vm3834_vm14 = vcmp.eq.s32.totalorder %v2741_v47, %v3810_v16  ;;  %vm3835_vm3 = vcmp.eq.s32.totalorder %v2741_v47, %v3811_v28 }
  0xdc   : > { %v3052_v26 = vsel %vm3833_vm11, 1.0, %v3814_v22  ;;  %v3058_v30 = vsel %vm3834_vm14, 1.0, %v3814_v22  ;;  %v3064_v20 = vsel %vm3835_vm3, 1.0, %v3814_v22  ;;  %vm3836_vm5 = vcmp.eq.s32.totalorder %v2741_v47, %v3812_v46 }
  0xdd   : > { %v3070_v32 = vsel %vm3836_vm5, 1.0, %v3814_v22  ;;  %vm3837_vm11 = vcmp.eq.s32.totalorder %v2741_v47, %v3813_v17  ;;  %vm3838_vm14 = vcmp.eq.s32.totalorder %v2744_v56, %v3806_v53  ;;  %vm3839_vm3 = vcmp.eq.s32.totalorder %v2744_v56, %v3807_v39 }
  0xde   : > { %v3076_v33 = vsel %vm3837_vm11, 1.0, %v3814_v22  ;;  %v3082_v48 = vsel %vm3838_vm14, 1.0, %v3814_v22  ;;  %v3088_v61 = vsel %vm3839_vm3, 1.0, %v3814_v22  ;;  %vm3840_vm5 = vcmp.eq.s32.totalorder %v2744_v56, %v3808_v58 }
  0xdf   : > { %v3094_v34 = vsel %vm3840_vm5, 1.0, %v3814_v22  ;;  %vm3841_vm11 = vcmp.eq.s32.totalorder %v2744_v56, %v3809_v44  ;;  %vm3842_vm14 = vcmp.eq.s32.totalorder %v2744_v56, %v3810_v16  ;;  %vm3843_vm3 = vcmp.eq.s32.totalorder %v2744_v56, %v3811_v28 }
  0xe0   : > { %v3100_v10 = vsel %vm3841_vm11, 1.0, %v3814_v22  ;;  %v3106_v63 = vsel %vm3842_vm14, 1.0, %v3814_v22  ;;  %v3112_v38 = vsel %vm3843_vm3, 1.0, %v3814_v22  ;;  %vm3844_vm5 = vcmp.eq.s32.totalorder %v2744_v56, %v3812_v46 }
  0xe1   : > { %v3118_v31 = vsel %vm3844_vm5, 1.0, %v3814_v22  ;;  %v3124_v36 = vsel %vm590_vm7, 1.0, %v3814_v22  ;;  %v3130_v27 = vsel %vm591_vm4, 1.0, %v3814_v22  ;;  %v3136_v35 = vsel %vm592_vm12, 1.0, %v3814_v22 }
  0xe2   : > { %vm3845_vm11 = vcmp.eq.s32.totalorder %v2746_v37, %v3808_v58  ;;  %vm3846_vm7 = vcmp.eq.s32.totalorder %v2746_v37, %v3809_v44  ;;  %vm3847_vm4 = vcmp.eq.s32.totalorder %v2746_v37, %v3810_v16  ;;  %vm3848_vm12 = vcmp.eq.s32.totalorder %v2746_v37, %v3811_v28 }
  0xe3   : > { %v3142_v41 = vsel %vm3845_vm11, 1.0, %v3814_v22  ;;  %v3148_v42 = vsel %vm3846_vm7, 1.0, %v3814_v22  ;;  %v3154_v62 = vsel %vm3847_vm4, 1.0, %v3814_v22  ;;  %v3160_v7 = vsel %vm3848_vm12, 1.0, %v3814_v22 }
  0xe4   : > { %v3166_v47 = vsel %vm597_vm2, 1.0, %v3814_v22  ;;  %v3172_v49 = vsel %vm598_vm15, 1.0, %v3814_v22  ;;  %v3178_v56 = vsel %vm599_vm10, 1.0, %v3814_v22  ;;  %v3184_v2 = vsel %vm600_vm8, 1.0, %v3814_v22 }
  0xe5   : > { %3849 = vst [vmem:[#allocation29_spill] sm:$0xff] %v3184_v2  ;;  %v3190_v0 = vsel %vm601_vm1, 1.0, %v3814_v22  ;;  %v3196_v37 = vsel %vm602_vm6, 1.0, %v3814_v22  ;;  %v3202_v40 = vsel %vm603_vm9, 1.0, %v3814_v22  ;;  %vm3853_vm2 = vcmp.eq.s32.totalorder %v2748_v57, %v3811_v28 }
  0xe6   : > { %3850 = vst [vmem:[#allocation30_spill] sm:$0xff] %v3190_v0  ;;  %v3208_v2 = vsel %vm3853_vm2, 1.0, %v3814_v22  ;;  %vm3855_vm8 = vcmp.eq.s32.totalorder %v2748_v57, %v3812_v46  ;;  %vm3857_vm10 = vcmp.eq.s32.totalorder %v2748_v57, %v3813_v17  ;;  %vm3858_vm15 = vcmp.eq.s32.totalorder %v2751_v50, %v3806_v53  ;;  %v3874_v46 = vld [vmem:[#allocation20_spill] sm:$0xff] }
  0xe7   : > { %3851 = vst [vmem:[#allocation31_spill] sm:$0xff] %v3196_v37  ;;  %v3214_v0 = vsel %vm3855_vm8, 1.0, %v3814_v22  ;;  %v3220_v37 = vsel %vm3857_vm10, 1.0, %v3814_v22  ;;  %vm3859_vm1 = vcmp.eq.s32.totalorder %v2751_v50, %v3807_v39  ;;  %vm3862_vm6 = vcmp.eq.s32.totalorder %v2751_v50, %v3809_v44 }
  0xe8   : > { %3852 = vst [vmem:[#allocation18_spill] sm:$0xff] %v3202_v40  ;;  %v3226_v40 = vsel %vm3858_vm15, 1.0, %v3814_v22  ;;  %v3244_v57 = vsel %vm3862_vm6, 1.0, %v3814_v22  ;;  %vm3864_vm9 = vcmp.eq.s32.totalorder %v2751_v50, %v3810_v16  ;;  %vm3866_vm14 = vcmp.eq.s32.totalorder %v2751_v50, %v3811_v28  ;;  %v3870_v16 = vld [vmem:[#allocation17_spill] sm:$0xff] }
  0xe9   : > { %3854 = vst [vmem:[#allocation19_spill] sm:$0xff] %v3208_v2  ;;  %v3232_v2 = vsel %vm3859_vm1, 1.0, %v3814_v22  ;;  %v3250_v53 = vsel %vm3864_vm9, 1.0, %v3814_v22  ;;  %v3256_v39 = vsel %vm3866_vm14, 1.0, %v3814_v22  ;;  %v3262_v58 = vsel %vm613_vm13, 1.0, %v3814_v22 }
  0xea   : > { %3856 = vst [vmem:[#allocation21_spill] sm:$0xff] %v3214_v0  ;;  %v3238_v0 = vsel %vm609_vm0, 1.0, %v3814_v22  ;;  %vm3869_vm0 = vcmp.eq.s32.totalorder %v2751_v50, %v3813_v17  ;;  %v3877_v17 = vld [vmem:[#allocation34_spill] sm:$0xff]  ;;  %vm3920_vm13 = vcmask 1041409   ;;  %vm455_vm3 = vcmask 130048  }
  0xeb   : > { %3860 = vst [vmem:[#allocation23_spill] sm:$0xff] %v3232_v2  ;;  %v3268_v44 = vsel %vm3869_vm0, 1.0, %v3814_v22  ;;  %v3876_v2 = vld [vmem:[#allocation41_spill] sm:$0xff]  ;;  %v3292_v22 = vmul.f32 %v2892_v43, %v3877_v17  ;;  %v3310_v43 = vmul.f32 %v2944_v29, %v3874_v46  ;;  %vm3921_vm5 = vcmask 1042434  }
  0xec   : > { %3861 = vst [vmem:[#allocation24_spill] sm:$0xff] %v3238_v0  ;;  %v3288_v50 = vmul.f32 %v2886_v12, %v3876_v2  ;;  %vm3922_vm11 = vcmask 1043459   ;;  %vm3923_vm7 = vcmask 1044484   ;;  %vm3924_vm4 = vcmask 1045509  }
  0xed   : > { %3863 = vst [vmem:[#allocation25_spill] sm:$0xff] %v3244_v57  ;;  %v3871_v57 = vld [vmem:[#allocation22_spill] sm:$0xff]  ;;  %vm3925_vm12 = vcmask 1046534   ;;  %vm3926_vm2 = vcmask 1047559   ;;  %vm499_vm10 = vcmask 261120  }
  0xee   : > { %3865 = vst [vmem:[#allocation32_spill] sm:$0xff] %v3250_v53  ;;  %v3272_v53 = vmul.f32 %v2854_v1, %v3870_v16  ;;  %v3276_v28 = vmul.f32 %v2860_v3, %v3871_v57  ;;  %v3878_v1 = vld [vmem:[#allocation33_spill] sm:$0xff]  ;;  %v1000_v29 = vmul.f32 %v2988_v5, %v3871_v57 }
  0xef   : > { %3867 = vst [vmem:[#allocation42_spill] sm:$0xff] %v3256_v39  ;;  %v3873_v39 = vld [vmem:[#allocation15_spill] sm:$0xff]  ;;  %v3296_v3 = vmul.f32 %v2906_v11, %v3878_v1  ;;  %v3314_v11 = vmul.f32 %v2950_v59, %v3876_v2 }
  0xf0   : > { %3868 = vst [vmem:[#allocation43_spill] sm:$0xff] %v3262_v58  ;;  %v3280_v0 = vmul.f32 %v2874_v45, %v3873_v39  ;;  %v3284_v58 = vmul.f32 %v2880_v8, %v3874_v46  ;;  %v991_v8 = vmul.f32 %v2918_v9, %v3870_v16  ;;  %v993_v12 = vmul.f32 %v2938_v60, %v3873_v39 }
  0xf1   : > { %3872 = vst [vmem:[#allocation44_spill] sm:$0xff] %v3276_v28  ;;  %v3879_v28 = vld [vmem:[#allocation27_spill] sm:$0xff]  ;;  %v3322_v9 = vmul.f32 %v2970_v6, %v3878_v1  ;;  %v999_v60 = vmul.f32 %v2982_v14, %v3870_v16  ;;  %v1001_v59 = vmul.f32 %v2998_v15, %v3873_v39  ;;  %v3340_v6 = vmul.f32 %v3010_v54, %v3876_v2 }
  0xf2   : > { %3875 = vst [vmem:[#allocation45_spill] sm:$0xff] %v3284_v58  ;;  %v3300_v45 = vmul.f32 %v2912_v51, %v3879_v28  ;;  %v992_v58 = vmul.f32 %v2924_v52, %v3871_v57  ;;  %v3318_v51 = vmul.f32 %v2956_v4, %v3877_v17  ;;  %v3326_v52 = vmul.f32 %v2976_v55, %v3879_v28 }
  0xf3   : > { %v3336_v4 = vmul.f32 %v3004_v13, %v3874_v46  ;;  %v3344_v55 = vmul.f32 %v3016_v19, %v3877_v17  ;;  %v3348_v14 = vmul.f32 %v3022_v21, %v3878_v1  ;;  %v3352_v5 = vmul.f32 %v3028_v23, %v3879_v28 }
  0xf4   : > { %3880 = vst [vmem:[#allocation35_spill] sm:$0xff] %v3300_v45  ;;  %v1007_v15 = vmul.f32 %v3034_v24, %v3870_v16  ;;  %v1008_v13 = vmul.f32 %v3040_v25, %v3871_v57  ;;  %v1009_v54 = vmul.f32 %v3046_v18, %v3873_v39  ;;  %v1010_v19 = vmul.f32 %v3052_v26, %v3874_v46  ;;  %v3894_v45 = vld [vmem:[#allocation19_spill] sm:$0xff] }
  0xf5   : > { %3881 = vst [vmem:[#allocation37_spill] sm:$0xff] %v3326_v52  ;;  %v3364_v21 = vmul.f32 %v3058_v30, %v3876_v2  ;;  %v3368_v23 = vmul.f32 %v3064_v20, %v3877_v17  ;;  %v3372_v24 = vmul.f32 %v3070_v32, %v3878_v1  ;;  %v3376_v25 = vmul.f32 %v3076_v33, %v3879_v28  ;;  %v3893_v52 = vld [vmem:[#allocation18_spill] sm:$0xff] }
  0xf6   : > { %3882 = vst [vmem:[#allocation39_spill] sm:$0xff] %v3348_v14  ;;  %v1015_v18 = vmul.f32 %v3082_v48, %v3870_v16  ;;  %v1016_v26 = vmul.f32 %v3088_v61, %v3871_v57  ;;  %v1017_v30 = vmul.f32 %v3094_v34, %v3873_v39  ;;  %v1018_v20 = vmul.f32 %v3100_v10, %v3874_v46  ;;  %v3902_v14 = vld [vmem:[#allocation32_spill] sm:$0xff] }
  0xf7   : > { %3883 = vst [vmem:[#allocation46_spill] sm:$0xff] %v3352_v5  ;;  %v3388_v32 = vmul.f32 %v3106_v63, %v3876_v2  ;;  %v3392_v33 = vmul.f32 %v3112_v38, %v3877_v17  ;;  %v3396_v48 = vmul.f32 %v3118_v31, %v3878_v1  ;;  %v3400_v61 = vmul.f32 %v3124_v36, %v3879_v28 }
  0xf8   : > { %3884 = vst [vmem:[#allocation48_spill] sm:$0xff] %v3372_v24  ;;  %v1023_v34 = vmul.f32 %v3130_v27, %v3870_v16  ;;  %v1024_v10 = vmul.f32 %v3136_v35, %v3871_v57  ;;  %v1025_v63 = vmul.f32 %v3142_v41, %v3873_v39  ;;  %v1026_v38 = vmul.f32 %v3148_v42, %v3874_v46  ;;  %v3890_v41 = vld [vmem:[#allocation29_spill] sm:$0xff] }
  0xf9   : > { %3885 = vst [vmem:[#allocation36_spill] sm:$0xff] %v3376_v25  ;;  %v1027_v31 = vmul.f32 %v3154_v62, %v3876_v2  ;;  %v3414_v25 = vmul.f32 %v3160_v7, %v3877_v17  ;;  %v3418_v36 = vmul.f32 %v3166_v47, %v3878_v1  ;;  %v3422_v27 = vmul.f32 %v3172_v49, %v3879_v28  ;;  %v3891_v62 = vld [vmem:[#allocation30_spill] sm:$0xff]  ;;  %v3892_v7 = vld [vmem:[#allocation31_spill] sm:$0xff]  ;;  %v3896_v49 = vld [vmem:[#allocation21_spill] sm:$0xff] }
  0xfa   : > { %3886 = vst [vmem:[#allocation38_spill] sm:$0xff] %v3396_v48  ;;  %v1031_v35 = vmul.f32 %v3178_v56, %v3870_v16  ;;  %v1032_v42 = vmul.f32 %v3890_v41, %v3871_v57  ;;  %v1034_v5 = vmul.f32 %v3892_v7, %v3874_v46  ;;  %v1035_v47 = vmul.f32 %v3893_v52, %v3876_v2  ;;  %v3900_v52 = vld [vmem:[#allocation24_spill] sm:$0xff] }
  0xfb   : > { %3887 = vst [vmem:[#allocation40_spill] sm:$0xff] %v3400_v61  ;;  %v1033_v61 = vmul.f32 %v3891_v62, %v3873_v39  ;;  %v3444_v56 = vmul.f32 %v3220_v37, %v3879_v28  ;;  %v1039_v41 = vmul.f32 %v3226_v40, %v3870_v16  ;;  %v3899_v62 = vld [vmem:[#allocation23_spill] sm:$0xff]  ;;  %v1041_v48 = vmul.f32 %v3900_v52, %v3873_v39 }
  0xfc   : > { %3888 = vst [vmem:[#allocation47_spill] sm:$0xff] %v3418_v36  ;;  %v3436_v36 = vmul.f32 %v3894_v45, %v3877_v17  ;;  %v1040_v7 = vmul.f32 %v3899_v62, %v3871_v57  ;;  %v3901_v45 = vld [vmem:[#allocation25_spill] sm:$0xff]  ;;  %v3904_v37 = vld [vmem:[#allocation43_spill] sm:$0xff]  ;;  %v3464_v40 = vmul.f32 %v3268_v44, %v3879_v28  ;;  %v3905_v57 = vld [vmem:[#allocation44_spill] sm:$0xff]  ;;  %v1124_v16 = vadd.f32 %v992_v58, %v991_v8 }
  0xfd   : > { %3889 = vst [vmem:[#allocation49_spill] sm:$0xff] %v3422_v27  ;;  %v3440_v27 = vmul.f32 %v3896_v49, %v3878_v1  ;;  %v1042_v24 = vmul.f32 %v3901_v45, %v3874_v46  ;;  %v1043_v49 = vmul.f32 %v3902_v14, %v3876_v2  ;;  %v1111_v39 = vadd.f32 %v3905_v57, %v3272_v53  ;;  %v430_v44 = vld [vmem:[%s3627_s5 + $0x70] sm:$0xff]  ;;  %v3913_v57 = vld [vmem:[#allocation37_spill] sm:$0xff] }
  0xfe   : > { %3895 = vst [vmem:[#allocation50_spill] sm:$0xff] %v3436_v36  ;;  %v1137_v62 = vadd.f32 %v1000_v29, %v999_v60  ;;  %v1150_v46 = vadd.f32 %v1008_v13, %v1007_v15  ;;  %v1163_v52 = vadd.f32 %v1016_v26, %v1015_v18  ;;  %v1176_v45 = vadd.f32 %v1024_v10, %v1023_v34  ;;  %v3906_v60 = vld [vmem:[#allocation45_spill] sm:$0xff]  ;;  %v429_v13 = vld [vmem:[%s3627_s5 + $0x68] sm:$0xff] }
  0xff   : > { %3897 = vst [vmem:[#allocation26_spill] sm:$0xff] %v3440_v27  ;;  %v3903_v27 = vld [vmem:[#allocation42_spill] sm:$0xff]  ;;  %v1112_v2 = vadd.f32 %v1111_v39, %v3280_v0  ;;  %v1125_v14 = vadd.f32 %v1124_v16, %v993_v12 }
 0x100   : > { %3898 = vst [vmem:[#allocation6_spill] sm:$0xff] %v3444_v56  ;;  %v1044_v36 = vmul.f32 %v3903_v27, %v3877_v17  ;;  %v3460_v56 = vmul.f32 %v3904_v37, %v3878_v1  ;;  %v1189_v17 = vadd.f32 %v1032_v42, %v1031_v35  ;;  %v1202_v27 = vadd.f32 %v1040_v7, %v1039_v41  ;;  %v431_v1 = vld [vmem:[%s3627_s5 + $0x78] sm:$0xff] }
 0x101   : > { %v1138_v28 = vadd.f32 %v1137_v62, %v1001_v59  ;;  %v1151_v53 = vadd.f32 %v1150_v46, %v1009_v54  ;;  %v1164_v58 = vadd.f32 %v1163_v52, %v1017_v30  ;;  %v1177_v8 = vadd.f32 %v1176_v45, %v1025_v63  ;;  %432 = vmatpush.msra.mxu1 %v431_v1  ;;  %v425_v52 = vld [vmem:[%s3627_s5 + $0x48] sm:$0xff] }
 0x102   : > { %v1113_v29 = vadd.f32 %v1112_v2, %v3906_v60  ;;  %v1126_v0 = vadd.f32 %v1125_v14, %v3310_v43  ;;  %v1190_v12 = vadd.f32 %v1189_v17, %v1033_v61  ;;  %v1203_v15 = vadd.f32 %v1202_v27, %v1041_v48  ;;  %1659 = vmatpush.msra.mxu3 %v431_v1  ;;  %v428_v43 = vld [vmem:[%s3627_s5 + $0x60] sm:$0xff]  ;;  %v3916_v14 = vld [vmem:[#allocation36_spill] sm:$0xff] }
 0x103   : > { %v1139_v18 = vadd.f32 %v1138_v28, %v3336_v4  ;;  %v1152_v26 = vadd.f32 %v1151_v53, %v1010_v19  ;;  %v1165_v34 = vadd.f32 %v1164_v58, %v1018_v20  ;;  %v1178_v59 = vadd.f32 %v1177_v8, %v1026_v38  ;;  %433 = vmatpush.msra.mxu1 %v430_v44  ;;  %v3915_v45 = vld [vmem:[#allocation46_spill] sm:$0xff]  ;;  %v3917_v27 = vld [vmem:[#allocation40_spill] sm:$0xff] }
 0x104   : > { %v1114_v54 = vadd.f32 %v1113_v29, %v3288_v50  ;;  %v1127_v30 = vadd.f32 %v1126_v0, %v3314_v11  ;;  %v1191_v10 = vadd.f32 %v1190_v12, %v1034_v5  ;;  %v1204_v63 = vadd.f32 %v1203_v15, %v1042_v24  ;;  %1660 = vmatpush.msra.mxu3 %v430_v44  ;;  %v427_v24 = vld [vmem:[%s3627_s5 + $0x58] sm:$0xff]  ;;  %v414_v53 = vld [vmem:[%s3626_s4] sm:$0xff] }
 0x105   : > { %v1140_v48 = vadd.f32 %v1139_v18, %v3340_v6  ;;  %v1153_v61 = vadd.f32 %v1152_v26, %v3364_v21  ;;  %v1166_v4 = vadd.f32 %v1165_v34, %v3388_v32  ;;  %v1179_v19 = vadd.f32 %v1178_v59, %v1027_v31  ;;  %434 = vmatpush.msra.mxu1 %v429_v13  ;;  %v3907_v31 = vld [vmem:[#allocation50_spill] sm:$0xff]  ;;  %v3918_v44 = vld [vmem:[#allocation49_spill] sm:$0xff] }
 0x106   : > { %v1115_v20 = vadd.f32 %v1114_v54, %v3292_v22  ;;  %v1128_v50 = vadd.f32 %v1127_v30, %v3318_v51  ;;  %v1192_v11 = vadd.f32 %v1191_v10, %v1035_v47  ;;  %v1205_v5 = vadd.f32 %v1204_v63, %v1043_v49  ;;  %1661 = vmatpush.msra.mxu3 %v429_v13  ;;  %v426_v47 = vld [vmem:[%s3627_s5 + $0x50] sm:$0xff]  ;;  %v3914_v16 = vld [vmem:[#allocation26_spill] sm:$0xff]  ;;  %v423_v30 = vld [vmem:[%s3627_s5 + $0x38] sm:$0xff] }
 0x107   : > { %v1141_v38 = vadd.f32 %v1140_v48, %v3344_v55  ;;  %v1154_v6 = vadd.f32 %v1153_v61, %v3368_v23  ;;  %v1167_v21 = vadd.f32 %v1166_v4, %v3392_v33  ;;  %v1180_v32 = vadd.f32 %v1179_v19, %v3414_v25  ;;  %435 = vmatpush.msra.mxu1 %v428_v43  ;;  %v3908_v55 = vld [vmem:[#allocation39_spill] sm:$0xff]  ;;  %v3909_v23 = vld [vmem:[#allocation48_spill] sm:$0xff]  ;;  %v3910_v33 = vld [vmem:[#allocation38_spill] sm:$0xff] }
 0x108   : > { %v1116_v22 = vadd.f32 %v1115_v20, %v3296_v3  ;;  %v1129_v51 = vadd.f32 %v1128_v50, %v3322_v9  ;;  %v1193_v35 = vadd.f32 %v1192_v11, %v3907_v31  ;;  %v1206_v42 = vadd.f32 %v1205_v5, %v1044_v36  ;;  %1662 = vmatpush.msra.mxu3 %v428_v43  ;;  %v3911_v25 = vld [vmem:[#allocation47_spill] sm:$0xff]  ;;  %v3919_v8 = vld [vmem:[#allocation6_spill] sm:$0xff] }
 0x109   : > { %v1142_v41 = vadd.f32 %v1141_v38, %v3908_v55  ;;  %v1155_v7 = vadd.f32 %v1154_v6, %v3909_v23  ;;  %v1168_v49 = vadd.f32 %v1167_v21, %v3910_v33  ;;  %v1181_v37 = vadd.f32 %v1180_v32, %v3911_v25  ;;  %436 = vmatpush.msra.mxu1 %v427_v24  ;;  %v415_v3 = vld [vmem:[%s3626_s4 + $0x8] sm:$0xff]  ;;  %v424_v0 = vld [vmem:[%s3627_s5 + $0x40] sm:$0xff]  ;;  %v422_v20 = vld [vmem:[%s3627_s5 + $0x30] sm:$0xff] }
 0x10a   : > { %v3912_v9 = vld [vmem:[#allocation35_spill] sm:$0xff]  ;;  %v1130_v39 = vadd.f32 %v1129_v51, %v3913_v57  ;;  %v1194_v62 = vadd.f32 %v1193_v35, %v3914_v16  ;;  %v1207_v46 = vadd.f32 %v1206_v42, %v3460_v56  ;;  %1663 = vmatpush.msra.mxu3 %v427_v24  ;;  %476 = vmatpush.msra.mxu2 %v415_v3  ;;  %v419_v57 = vld [vmem:[%s3627_s5 + $0x18] sm:$0xff] }
 0x10b   : > { %v1117_v36 = vadd.f32 %v1116_v22, %v3912_v9  ;;  %v1143_v2 = vadd.f32 %v1142_v41, %v3915_v45  ;;  %v1156_v17 = vadd.f32 %v1155_v7, %v3916_v14  ;;  %v1169_v1 = vadd.f32 %v1168_v49, %v3917_v27  ;;  %437 = vmatpush.msra.mxu1 %v426_v47  ;;  %v421_v22 = vld [vmem:[%s3627_s5 + $0x28] sm:$0xff]  ;;  %v420_v7 = vld [vmem:[%s3627_s5 + $0x20] sm:$0xff] }
 0x10c   : > { %v1182_v28 = vadd.f32 %v1181_v37, %v3918_v44  ;;  %v1131_v56 = vrot.slane %v1130_v39, 4  ;;  %v1195_v60 = vadd.f32 %v1194_v62, %v3919_v8  ;;  %v1208_v29 = vadd.f32 %v1207_v46, %v3464_v40  ;;  %1664 = vmatpush.msra.mxu3 %v426_v47  ;;  %477 = vmatpush.msra.mxu2 %v414_v53  ;;  %v417_v44 = vld [vmem:[%s3627_s5 + $0x8] sm:$0xff]  ;;  %v416_v8 = vld [vmem:[%s3627_s5] sm:$0xff] }
 0x10d   : > { %v1118_v58 = vrot.slane %v1117_v36, 4  ;;  %v1144_v12 = vrot.slane %v1143_v2, 4  ;;  %v1157_v15 = vrot.slane %v1156_v17, 4  ;;  %v1170_v13 = vrot.slane %v1169_v1, 4  ;;  %438 = vmatpush.msra.mxu1 %v425_v52 }
 0x10e   : > { %v1183_v18 = vrot.slane %v1182_v28, 4  ;;  %v1132_v34 = vadd.f32 %v1131_v56, %v1130_v39  ;;  %v1196_v59 = vrot.slane %v1195_v60, 4  ;;  %v1209_v54 = vrot.slane %v1208_v29, 4  ;;  %1665 = vmatpush.msra.mxu3 %v425_v52  ;;  %v412_v39 = vld [vmem:[%s3544_s15] sm:$0xff] }
 0x10f   : > { %v1119_v26 = vadd.f32 %v1118_v58, %v1117_v36  ;;  %v1145_v40 = vadd.f32 %v1144_v12, %v1143_v2  ;;  %v1158_v10 = vadd.f32 %v1157_v15, %v1156_v17  ;;  %v1171_v63 = vadd.f32 %v1170_v13, %v1169_v1  ;;  %439 = vmatpush.msra.mxu1 %v424_v0  ;;  %v406_v37 = vpop.f32.mrf.mxu0  ;;  %v418_v2 = vld [vmem:[%s3627_s5 + $0x10] sm:$0xff]  ;;  %v3927_v12 = vld [vmem:[#allocation9_spill] sm:$0xff] }
 0x110   : > { %v1184_v43 = vadd.f32 %v1183_v18, %v1182_v28  ;;  %v1133_v61 = vrot.slane %v1132_v34, 2  ;;  %v1197_v4 = vadd.f32 %v1196_v59, %v1195_v60  ;;  %v1210_v19 = vadd.f32 %v1209_v54, %v1208_v29  ;;  %1666 = vmatpush.msra.mxu3 %v424_v0  ;;  %1523 = vmatmul.msk.f32.vlgmr.msra.gmra.mxu2 %vm455_vm3, %v412_v39  ;;  %v413_v0 = vld [vmem:[%s3544_s15 + $0x8] sm:$0xff]  ;;  %v1721_v54 = vld [vmem:[%s3628_s6] ss:$0 sm:$0xff] }
 0x111   : > { %v1120_v48 = vrot.slane %v1119_v26, 2  ;;  %v1146_v50 = vrot.slane %v1145_v40, 2  ;;  %v1159_v11 = vrot.slane %v1158_v10, 2  ;;  %v1172_v5 = vrot.slane %v1171_v63, 2  ;;  %440 = vmatpush.msra.mxu1 %v423_v30 }
 0x112   : > { %v1185_v24 = vrot.slane %v1184_v43, 2  ;;  %v1134_v6 = vadd.f32 %v1133_v61, %v1132_v34  ;;  %v1198_v21 = vrot.slane %v1197_v4, 2  ;;  %v1211_v32 = vrot.slane %v1210_v19, 2  ;;  %1667 = vmatpush.msra.mxu3 %v423_v30 }
 0x113   : > { %v1121_v38 = vadd.f32 %v1120_v48, %v1119_v26  ;;  %v1147_v51 = vadd.f32 %v1146_v50, %v1145_v40  ;;  %v1160_v31 = vadd.f32 %v1159_v11, %v1158_v10  ;;  %v1173_v35 = vadd.f32 %v1172_v5, %v1171_v63  ;;  %441 = vmatpush.msra.mxu1 %v422_v20  ;;  %v3929_v5 = vld [vmem:[#allocation28_spill] sm:$0xff] }
 0x114   : > { %v1186_v42 = vadd.f32 %v1185_v24, %v1184_v43  ;;  %v1135_v55 = vrot.slane %v1134_v6, 1  ;;  %v1199_v41 = vadd.f32 %v1198_v21, %v1197_v4  ;;  %v1212_v23 = vadd.f32 %v1211_v32, %v1210_v19  ;;  %1668 = vmatpush.msra.mxu3 %v422_v20  ;;  %v1722_v43 = vld [vmem:[%s3629_s7] ss:$0 sm:$0xff] }
 0x115   : > { %v1122_v47 = vrot.slane %v1121_v38, 1  ;;  %v1148_v33 = vrot.slane %v1147_v51, 1  ;;  %v1161_v49 = vrot.slane %v1160_v31, 1  ;;  %v1174_v25 = vrot.slane %v1173_v35, 1  ;;  %442 = vmatpush.msra.mxu1 %v421_v22 }
 0x116   : > { %v1136_v9 = vadd.f32 %v1135_v55, %v1134_v6  ;;  %v1187_v36 = vrot.slane %v1186_v42, 1  ;;  %1669 = vmatpush.msra.mxu3 %v421_v22  ;;  %v1200_v62 = vrot.slane %v1199_v41, 1  ;;  %v1213_v52 = vrot.slane %v1212_v23, 1 }
 0x117   : > { %v1123_v3 = vadd.f32 %v1122_v47, %v1121_v38  ;;  %v1149_v16 = vadd.f32 %v1148_v33, %v1147_v51  ;;  %443 = vmatpush.msra.mxu1 %v420_v7  ;;  %v1162_v46 = vadd.f32 %v1161_v49, %v1160_v31  ;;  %v1175_v14 = vadd.f32 %v1174_v25, %v1173_v35  ;;  %v409_v13 = vpop.f32.mrf.mxu0  ;;  %v1723_v31 = vld [vmem:[#allocation2] ss:$0 sm:$0xff] }
 0x118   : > { %1670 = vmatpush.msra.mxu3 %v420_v7  ;;  %v1188_v27 = vadd.f32 %v1187_v36, %v1186_v42  ;;  %v1201_v28 = vadd.f32 %v1200_v62, %v1199_v41  ;;  %v1214_v58 = vadd.f32 %v1213_v52, %v1212_v23  ;;  %vm3928_vm8 = vcmp.lt.s32.totalorder %v3927_v12, 8  ;;  %1524 = vmatmul.msk.f32.gmra.mxu2 %vm455_vm3, %v413_v0 }
 0x119   : > { %v1337_v45 = vsel %vm3920_vm13, %v1136_v9, %v1123_v3  ;;  %444 = vmatpush.msra.mxu1 %v419_v57  ;;  %vm1405_vm0 = vcmp.eq.s32.totalorder %v3927_v12, 8 }
 0x11a   : > { %v1339_v17 = vsel %vm3921_vm5, %v1149_v16, %v1337_v45  ;;  %1671 = vmatpush.msra.mxu3 %v419_v57 }
 0x11b   : > { %v1341_v1 = vsel %vm3922_vm11, %v1162_v46, %v1339_v17  ;;  %445 = vmatpush.msra.mxu1 %v418_v2 }
 0x11c   : > { %v1343_v53 = vsel %vm3923_vm7, %v1175_v14, %v1341_v1  ;;  %1672 = vmatpush.msra.mxu3 %v418_v2 }
 0x11d   : > { %v1345_v56 = vsel %vm3924_vm4, %v1188_v27, %v1343_v53  ;;  %446 = vmatpush.msra.mxu1 %v417_v44 }
 0x11e   : > { %v1347_v60 = vsel %vm3925_vm12, %v1201_v28, %v1345_v56  ;;  %1673 = vmatpush.msra.mxu3 %v417_v44 }
 0x11f   : > { %v1349_v29 = vsel %vm3926_vm2, %v1214_v58, %v1347_v60  ;;  %447 = vmatpush.msra.mxu1 %v416_v8 }
 0x120   : > { %v1359_v15 = vsel %vm3928_vm8, %v1349_v29, -1e+30  ;;  %448 = vmatmul.f32.vlgmr.msra.gmra.mxu1 %v406_v37  ;;  %1674 = vmatpush.msra.mxu3 %v416_v8 }
 0x121   : > { %1361 = vmax.xlane.f32.xlu1 %v1359_v15  ;;  %451 = vmatmul.f32.vlgmr.msra.gmra.mxu3 %v409_v13 }
 0x13f   : > { %v1364_v19 = vpop.xlane.xlu2 %1363 }
 0x140   : > { %v1366_v24 = vsub.f32 %v3929_v5, %v1364_v19 }
 0x142   : > { %v1369_v21 = vmul.f32 1.442695, %v1366_v24 }
 0x193   : > { %v479_v59 = vpop.f32.mrf.mxu2 }
 0x194   : > { %v1362_v18 = vpop.xlane.xlu1 %1361 }
 0x195   : > { %v1365_v26 = vsub.f32 %v1359_v15, %v1362_v18 }
 0x197   : > { %v1367_v34 = vmul.f32 1.442695, %v1365_v26 }
 0x199   : > { %1724 = vpow2.f32 %v1367_v34 }
 0x19a   : > { %1726 = vpow2.f32 %v1369_v21 }
 0x19b   : > { %v482_v4 = vpop.f32.mrf.mxu2 }
 0x19d   : > { %v449_v30 = vpop.f32.mrf.mxu1 }
 0x19e   : > { %v480_v10 = vadd.f32 %v479_v59, %v449_v30 }
 0x19f   : > { %v1725_v40 = vpop.eup %1724 }
 0x1a0   : > { %1371 = vadd.xlane.f32.xlu1 %v1725_v40  ;;  %v489_v63 = vadd.f32 %v1721_v54, %v480_v10  ;;  %v1727_v51 = vpop.eup %1726 }
 0x1a2   : > { %v491_v48 = vmax.f32 %v489_v63, 0.0 }
 0x1a4   : > { %v497_v61 = vmul.f32 %v1722_v43, %v491_v48  ;;  %v452_v20 = vpop.f32.mrf.mxu3 }
 0x1a5   : > { %v483_v11 = vadd.f32 %v482_v4, %v452_v20 }
 0x1a6   : > { %v500_v50 = vsel %vm499_vm10, %v497_v61, 0.0 }
 0x1a7   : > { %501 = vadd.xlane.f32.xlu0 %v500_v50  ;;  %v490_v38 = vadd.f32 %v1721_v54, %v483_v11 }
 0x1a9   : > { %v492_v6 = vmax.f32 %v490_v38, 0.0 }
 0x1ab   : > { %v498_v32 = vmul.f32 %v1722_v43, %v492_v6 }
 0x1ad   : > { %v503_v22 = vsel %vm499_vm10, %v498_v32, 0.0 }
 0x1ae   : > { %504 = vadd.xlane.f32.xlu2 %v503_v22 }
 0x1b6   : > { %1373 = vadd.xlane.f32.xlu2 %v1727_v51 }
 0x213   : > { %v1372_v41 = vpop.xlane.xlu1 %1371 }
 0x214   : > { %1728 = vrcp.f32 %v1372_v41  ;;  %v1386_v57 = vand.u32 2147483648, %v1372_v41  ;;  %vm1380_vm1 = vweird.f32 %v1372_v41  ;;  %v1384_v39 = vand.u32 2147483647, %v1372_v41 }
 0x216   : > { %v1387_v46 = vor.u32 1.1754944e-38, %v1386_v57  ;;  %vm1385_vm9 = vcmp.eq.f32.partialorder %v1384_v39, 8.507059e+37 }
 0x21a   : > { %v502_v35 = vpop.xlane.xlu0 %501  ;;  %v1729_v7 = vpop.eup %1728 }
 0x21b   : > { %v510_v42 = vadd.f32 %v1723_v31, %v502_v35  ;;  %v1376_v33 = vmul.f32 %v1729_v7, %v1372_v41  ;;  %vm1381_vm15 = vweird.f32 %v1729_v7 }
 0x21c   : > { %vm1382_vm6 = vmor %vm1380_vm1, %vm1381_vm15 }
 0x21d   : > { %1408 = vperm.xlu0 %1718, %v510_v42   ;;  %v1377_v49 = vsub.f32 1.0, %v1376_v33 }
 0x21f   : > { %v1378_v37 = vmul.f32 %v1729_v7, %v1377_v49 }
 0x221   : > { %v505_v47 = vpop.xlane.xlu2 %504  ;;  %v1379_v9 = vadd.f32 %v1729_v7, %v1378_v37 }
 0x222   : > { %v511_v55 = vadd.f32 %v1723_v31, %v505_v47 }
 0x223   : > { %v1383_v62 = vsel %vm1382_vm6, %v1729_v7, %v1379_v9 }
 0x224   : > { %1413 = vperm.xlu1 %1719, %v511_v55   ;;  %v1388_v52 = vsel %vm1385_vm9, %v1387_v46, %v1383_v62 }
 0x225   : > { %v1389_v17 = vmul.f32 %v1725_v40, %v1388_v52 }
 0x229   : > { %v1374_v23 = vpop.xlane.xlu2 %1373 }
 0x22a   : > { %1730 = vrcp.f32 %v1374_v23  ;;  %v1401_v2 = vand.u32 2147483648, %v1374_v23  ;;  %vm1395_vm13 = vweird.f32 %v1374_v23  ;;  %v1399_v14 = vand.u32 2147483647, %v1374_v23 }
 0x22c   : > { %v1402_v28 = vor.u32 1.1754944e-38, %v1401_v2  ;;  %vm1400_vm5 = vcmp.eq.f32.partialorder %v1399_v14, 8.507059e+37 }
 0x230   : > { %v1731_v25 = vpop.eup %1730 }
 0x231   : > { %v1391_v3 = vmul.f32 %v1731_v25, %v1374_v23  ;;  %vm1396_vm14 = vweird.f32 %v1731_v25 }
 0x232   : > { %vm1397_vm3 = vmor %vm1395_vm13, %vm1396_vm14 }
 0x233   : > { %v1392_v36 = vsub.f32 1.0, %v1391_v3 }
 0x235   : > { %v1393_v16 = vmul.f32 %v1731_v25, %v1392_v36 }
 0x237   : > { %v1394_v45 = vadd.f32 %v1731_v25, %v1393_v16 }
 0x239   : > { %v1398_v1 = vsel %vm1397_vm3, %v1731_v25, %v1394_v45 }
 0x23a   : > { %v1403_v53 = vsel %vm1400_vm5, %v1402_v28, %v1398_v1 }
 0x23b   : > { %v1404_v58 = vmul.f32 %v1727_v51, %v1403_v53 }
 0x28f   : > { %v1409_v27 = vpop.permute.xlu0 %1408 }
 0x290   : > { %v1416_v44 = vsel %vm1405_vm0, %v1409_v27, %v1389_v17 }
 0x291   : > { %1418 = vst [vmem:[%s344_s23] sm:$0xff] %v1416_v44 }
 0x296   : > { %v1414_v56 = vpop.permute.xlu1 %1413 }
 0x297   : > { %v1417_v8 = vsel %vm1405_vm0, %v1414_v56, %v1404_v58 }
 0x298   : > { %1419 = vst [vmem:[%s344_s23 + $0x8] sm:$0xff] %v1417_v8 }
 0x299   : > { %1759 = shalt.err (!%p1756_p3)
}
 0x29a   : > { %s1798_s24 = smov 128   ;;  %s1799_s23 = smov 8  }
 0x29b   : > { %1675 = dma.vmem_to_hbm [thread:$0]  (%p1891_p5), %s1434_s28, 256, %s1436_s29, %s1421_s8, %s1798_s24, %s1798_s24, %s1799_s23  }
 0x29c PF: > { %p1681_p4 = scmp.ge.s32.totalorder %s1794_s14, 2  ;;  %s1450_s26 = sand.u32 1, %s1782_s11  }
 0x29d   : > { %s1451_s27 = scalar_lea.sflag [#allocation4], %s1450_s26 }
 0x29e   : > { %p1678_p7 = pnand %p1681_p4, %p1895_p6 }
 0x2a0   : > { %p1679_p8 = pneg %p1678_p7 }
 0x2a2   : > { %1777 = dma.done.wait (%p1679_p8), %s1451_s27, 256  }
 0x2a3   : > { %1779 = vsyncadd (%p1679_p8), %s1451_s27, 4294967040  ;;  %p21_p9 = scmp.ge.s32.totalorder %s1878_s16, 6   ;;  %s3930_s11 = smov %s1786_s12 }
 0x2a4   : > { %s3931_s12 = smov %s1790_s13  ;;  %s3932_s13 = smov %s1889_s19 }
 0x2a5   : > { %s3933_s14 = smov %s1878_s16  ;;  %23 = sbr.rel (!%p21_p9) target bundleno = 6 (0x6), region = 94 }
 0x2aa   :  { %1457 = vsyncpa [#allocation4], 1 }
 0x2ab   :  { %1459 = vsyncpa [#allocation4 + $0x1], 1 }

</bundles_post_ra>
